<compile_context>
chip_gen: v6e
topology: v6e:2x2x1
jax: 0.10.0
libtpu: 0.0.40
codegen_flags: <defaults>
</compile_context>

<pallas_src>
import numpy as np
import jax
import jax.numpy as jnp
from jax.experimental import pallas as pl
from jax.experimental.pallas import tpu as pltpu

MIN_VAL = 0.1
MAX_VAL = 10.0
N_BINS = 256      # n_bins default of UnetAdaptiveBins
FEATURES = 2048   # DecoderBN num_features / bottleneck_features default


def _round_up(x, m):
    return ((x + m - 1) // m) * m


def _choose_k_tiling(K, tk_max=2560):
    """Round K to a multiple of 128 and pick tk so Kp % tk == 0, tk <= tk_max."""
    kp0 = _round_up(K, 128)
    steps = -(-kp0 // tk_max)
    tk = _round_up(-(-kp0 // steps), 128)
    return tk * steps, tk


def _choose_tn(np_):
    # prefer Np/tn >= 2 so one parallel axis feeds both v7x TensorCores
    for cand in (512, 256, 128):
        if np_ % cand == 0 and np_ // cand >= 2:
            return cand
    for cand in (512, 256, 128):
        if np_ % cand == 0:
            return cand
    return 128


# --------------------------------------------------------------------------
# Pallas kernel 1: tiled bf16 GEMM with fused bias and optional fused
# BatchNorm2d(batch stats, gamma=1, beta=0, eps=1e-5) + LeakyReLU(0.01).
# --------------------------------------------------------------------------
def _make_matmul_kernel(bn_leaky, m_valid, tm):
    needs_mask = bn_leaky and (m_valid != tm)

    def kernel(a_ref, w_ref, b_ref, o_ref, acc_ref):
        @pl.when(pl.program_id(2) == 0)
        def _():
            acc_ref[...] = jnp.zeros_like(acc_ref)

        acc_ref[...] += jnp.dot(a_ref[...], w_ref[...],
                                preferred_element_type=jnp.float32)

        @pl.when(pl.program_id(2) == pl.num_programs(2) - 1)
        def _():
            y = acc_ref[...] + b_ref[...]
            if bn_leaky:
                inv_m = 1.0 / float(m_valid)
                if needs_mask:   # mask out zero-padded M rows from the stats
                    row = jax.lax.broadcasted_iota(jnp.int32, y.shape, 0)
                    mask = (row < m_valid).astype(jnp.float32)
                    mean = jnp.sum(y * mask, axis=0, keepdims=True) * inv_m
                    d = (y - mean) * mask
                else:
                    mean = jnp.sum(y, axis=0, keepdims=True) * inv_m
                    d = y - mean
                var = jnp.sum(d * d, axis=0, keepdims=True) * inv_m
                yn = (y - mean) * jax.lax.rsqrt(var + 1e-5)
                y = jnp.where(yn >= 0.0, yn, 0.01 * yn)
            o_ref[...] = y.astype(o_ref.dtype)

    return kernel


def pallas_matmul_bias(a, w_p, b_p, tk, n_valid, bn_leaky=False):
    """a:(M,K) @ w_p:(Kp,Np) bf16 (pre-padded) + b_p:(1,Np) f32, -> f32 (M,n_valid)."""
    M, K = a.shape
    Kp, Np = w_p.shape
    Mp = _round_up(M, 16)

    a_p = a.astype(jnp.bfloat16)
    if (Mp - M) or (Kp - K):
        a_p = jnp.pad(a_p, ((0, Mp - M), (0, Kp - K)))

    tn = _choose_tn(Np)
    if bn_leaky:
        if Mp > 512:
            # TODO(synk): fused BN for M > 512 needs a cross-block channel reduction.
            raise NotImplementedError("fused BN+LeakyReLU requires M <= 512")
        tm = Mp
    else:
        if Mp <= 512:
            tm = Mp
            if Np // tn == 1 and Mp % 32 == 0:   # give v7x a 2nd parallel block
                tm = Mp // 2
        else:
            tm = 16
            for cand in (512, 256, 128, 64, 32, 16):
                if Mp % cand == 0:
                    tm = cand
                    break

    grid = (Mp // tm, Np // tn, Kp // tk)
    kernel = _make_matmul_kernel(bn_leaky, M, tm)

    out = pl.pallas_call(
        kernel,
        out_shape=jax.ShapeDtypeStruct((Mp, Np), jnp.float32),
        grid_spec=pltpu.PrefetchScalarGridSpec(
            num_scalar_prefetch=0,
            grid=grid,
            in_specs=[
                pl.BlockSpec((tm, tk), lambda i, j, k: (i, k)),
                pl.BlockSpec((tk, tn), lambda i, j, k: (k, j)),
                pl.BlockSpec((1, tn), lambda i, j, k: (0, j)),
            ],
            out_specs=pl.BlockSpec((tm, tn), lambda i, j, k: (i, j)),
            scratch_shapes=[pltpu.VMEM((tm, tn), jnp.float32)],
        ),
        compiler_params=pltpu.CompilerParams(
            dimension_semantics=("parallel", "parallel", "arbitrary")),
    )(a_p, w_p, b_p)
    return out[:M, :n_valid]


# --------------------------------------------------------------------------
# Pallas kernel 2: AdaBins head (with mViT conv_input folded in)
#   adaptive_avg_pool2d -> conv_input(1x1, commutes with pool) ->
#   Linear+sigmoid (bin widths) -> conv_out(1x1)+softmax ->
#   pad(min_val)+cumsum -> bin centers -> weighted sum over bins.
# --------------------------------------------------------------------------
def _adabins_head_kernel(feat_ref, wm_ref, bm_ref, wp_ref, bp_ref,
                         wc_ref, bc_ref, tmat_ref, pred_ref):
    feat = feat_ref[...]                          # (N, H*W, C) f32
    pooled = jnp.mean(feat, axis=1)               # adaptive_avg_pool2d -> (N, C)
    # mViT.conv_input is a 1x1 conv, so it commutes with the spatial mean.
    x = jnp.dot(pooled, wm_ref[...], preferred_element_type=jnp.float32) + bm_ref[...]

    z = jnp.dot(x, wp_ref[...], preferred_element_type=jnp.float32) + bp_ref[...]
    bin_widths_normed = pl.reciprocal(1.0 + jnp.exp(-z), approx=True)  # sigmoid

    # TODO(synk): in the reference, range_attention_maps = ones_like(x[:, :1]) has
    # shape (N, 1) which is incompatible with conv_out = Conv2d(128, n_bins);
    # we interpret it as an all-ones (N, 128, 1, 1) map so conv_out is well-defined.
    ones = jnp.ones_like(x)                       # (N, 128)
    logits = jnp.dot(ones, wc_ref[...], preferred_element_type=jnp.float32) + bc_ref[...]
    logits = logits - jnp.max(logits, axis=1, keepdims=True)
    e = jnp.exp(logits)
    probs = e * pl.reciprocal(jnp.sum(e, axis=1, keepdims=True), approx=True)

    w = (MAX_VAL - MIN_VAL) * bin_widths_normed   # (N, n_bins)
    # cumsum of [min_val, w...] and centers = 0.5*(edges[:-1]+edges[1:]) is exactly
    # centers[i] = min_val + sum_{j<i} w_j + 0.5*w_i  (matmul with hoisted tmat).
    centers = MIN_VAL + jnp.dot(w, tmat_ref[...], preferred_element_type=jnp.float32)

    pred_ref[...] = jnp.sum(probs * centers, axis=1, keepdims=True)   # (N, 1)


def pallas_adabins_head(feat_nhwc, p):
    n, h, w_, c = feat_nhwc.shape
    feat = feat_nhwc.reshape(n, h * w_, c).astype(jnp.float32)
    return pl.pallas_call(
        _adabins_head_kernel,
        out_shape=jax.ShapeDtypeStruct((n, 1), jnp.float32),
    )(feat, p['mvit_w'], p['mvit_b'], p['proj_w'], p['proj_b'],
      p['out_w'], p['out_b'], p['tmat'])


# --------------------------------------------------------------------------
# Glue: im2col, conv wrapper, bilinear upsampling (align_corners=True)
# --------------------------------------------------------------------------
def im2col(x, k, stride, pad):
    if pad:
        x = jnp.pad(x, ((0, 0), (pad, pad), (pad, pad), (0, 0)))
    n, hp, wp, c = x.shape
    ho = (hp - k) // stride + 1
    wo = (wp - k) // stride + 1
    cols = []
    for di in range(k):
        for dj in range(k):
            cols.append(x[:, di:di + (ho - 1) * stride + 1:stride,
                           dj:dj + (wo - 1) * stride + 1:stride, :])
    cols = jnp.concatenate(cols, axis=-1)                    # (N, Ho, Wo, k*k*C)
    return cols.reshape(n * ho * wo, c * k * k), (n, ho, wo)


def conv2d_pallas(x, cp, stride=1, pad=0, bn_leaky=False):
    """x NHWC; cp holds the pre-padded bf16 GEMM weight and f32 bias."""
    # TODO(synk): im2col is still materialized in HBM; at real resolutions the
    # (ky, kx, cin) expansion should be folded into the GEMM's K index_map.
    x = x.astype(jnp.bfloat16)
    cols, (n, ho, wo) = im2col(x, cp['k'], stride, pad)
    y = pallas_matmul_bias(cols, cp['w'], cp['b'], tk=cp['tk'],
                           n_valid=cp['cout'], bn_leaky=bn_leaky)
    return y.reshape(n, ho, wo, cp['cout'])


def resize_bilinear_align_corners(x, out_h, out_w):
    n, h, w, c = x.shape

    def coords(o, i):
        if o == 1:
            return jnp.zeros((o,), jnp.float32)
        return jnp.arange(o, dtype=jnp.float32) * (float(i - 1) / float(o - 1))

    ys = coords(out_h, h)
    xs = coords(out_w, w)
    y0 = jnp.floor(ys).astype(jnp.int32)
    y1 = jnp.minimum(y0 + 1, h - 1)
    wy = (ys - y0.astype(jnp.float32))[None, :, None, None]
    x0 = jnp.floor(xs).astype(jnp.int32)
    x1 = jnp.minimum(x0 + 1, w - 1)
    wx = (xs - x0.astype(jnp.float32))[None, None, :, None]
    top = x[:, y0] * (1.0 - wy) + x[:, y1] * wy
    return top[:, :, x0] * (1.0 - wx) + top[:, :, x1] * wx


# --------------------------------------------------------------------------
# Parameters (deterministic, shapes from the module __init__), pre-packed for
# the GEMM kernel (bf16, padded to (Kp, Np)) at init time.
# --------------------------------------------------------------------------
def init_params(key):
    keys = iter(jax.random.split(key, 64))

    def conv_p(k_, cin, cout):
        kw, kb = next(keys), next(keys)
        kdim = k_ * k_ * cin
        w = jax.random.normal(kw, (k_, k_, cin, cout), jnp.float32) * (
            1.0 / float(np.sqrt(kdim)))
        b = 0.01 * jax.random.normal(kb, (cout,), jnp.float32)
        kp, tk = _choose_k_tiling(kdim)
        np_ = _round_up(cout, 128)
        w_gemm = jnp.pad(w.reshape(kdim, cout),
                         ((0, kp - kdim), (0, np_ - cout))).astype(jnp.bfloat16)
        b_gemm = jnp.pad(b, (0, np_ - cout)).reshape(1, np_).astype(jnp.float32)
        return {'w': w_gemm, 'b': b_gemm, 'k': k_, 'cout': cout, 'tk': tk}

    F = FEATURES
    p = {}
    # Synthetic stand-in for the injected (external) EfficientNet backend.
    backend_spec = [(3, 8, 2), (8, 16, 1), (16, 24, 1), (24, 24, 1), (24, 40, 2),
                    (40, 64, 2), (64, 128, 2), (128, 176, 1), (176, 512, 1),
                    (512, 1024, 1), (1024, 2048, 1)]
    p['backend'] = []
    for cin, cout, stride in backend_spec:
        kw = next(keys)
        p['backend'].append({
            'w': jax.random.normal(kw, (cin, cout), jnp.float32) * (1.0 / float(np.sqrt(cin))),
            'stride': stride})

    # DecoderBN(num_features=2048, num_classes=128, bottleneck_features=2048)
    p['conv2'] = conv_p(1, F, F)                                  # k=1, padding=1 (!)
    p['up1'] = {'c1': conv_p(3, F // 1 + 112 + 64, F // 2), 'c2': conv_p(3, F // 2, F // 2)}
    p['up2'] = {'c1': conv_p(3, F // 2 + 40 + 24, F // 4), 'c2': conv_p(3, F // 4, F // 4)}
    p['up3'] = {'c1': conv_p(3, F // 4 + 24 + 16, F // 8), 'c2': conv_p(3, F // 8, F // 8)}
    p['up4'] = {'c1': conv_p(3, F // 8 + 16 + 8, F // 16), 'c2': conv_p(3, F // 16, F // 16)}
    p['conv3'] = conv_p(3, F // 16, 128)                          # num_classes=128

    # mViT(128, dim_out=n_bins=256, embedding_dim=128): conv_input folded into head
    kw, kb = next(keys), next(keys)
    p['mvit_w'] = jax.random.normal(kw, (128, 128), jnp.float32) * (1.0 / float(np.sqrt(128)))
    p['mvit_b'] = (0.01 * jax.random.normal(kb, (128,), jnp.float32)).reshape(1, 128)
    kw, kb = next(keys), next(keys)
    p['proj_w'] = jax.random.normal(kw, (128, N_BINS), jnp.float32) * (1.0 / float(np.sqrt(128)))
    p['proj_b'] = (0.01 * jax.random.normal(kb, (N_BINS,), jnp.float32)).reshape(1, N_BINS)
    # conv_out: Conv2d(128, n_bins, 1) + Softmax(dim=1)
    kw, kb = next(keys), next(keys)
    p['out_w'] = jax.random.normal(kw, (128, N_BINS), jnp.float32) * (1.0 / float(np.sqrt(128)))
    p['out_b'] = (0.01 * jax.random.normal(kb, (N_BINS,), jnp.float32)).reshape(1, N_BINS)

    # Triangular bin-center matrix, hoisted out of the head kernel.
    row = np.arange(N_BINS)[:, None]
    col = np.arange(N_BINS)[None, :]
    p['tmat'] = jnp.asarray(np.where(row < col, 1.0,
                                     np.where(row == col, 0.5, 0.0)).astype(np.float32))
    return p


# --------------------------------------------------------------------------
# Forward pass
# --------------------------------------------------------------------------
def synthetic_backend_features(x_nhwc, backend_params):
    # Encoder.forward: features = [x] + output of each backend block.
    feats = [x_nhwc]
    h = x_nhwc
    for bp in backend_params:
        if bp['stride'] == 2:
            n, H, W, c = h.shape
            h = h.reshape(n, H // 2, 2, W // 2, 2, c).mean(axis=(2, 4))
        h = jnp.tanh(h @ bp['w'])
        feats.append(h)
    return feats


def decoder_forward(features, p):
    x_block0, x_block1, x_block2, x_block3, x_block4 = (
        features[4], features[5], features[6], features[8], features[11])
    x_d0 = conv2d_pallas(x_block4, p['conv2'], stride=1, pad=1)

    def up(x, skip, pp):
        up_x = resize_bilinear_align_corners(x, skip.shape[1], skip.shape[2])
        f = jnp.concatenate([up_x, skip.astype(up_x.dtype)], axis=-1)
        h = conv2d_pallas(f, pp['c1'], stride=1, pad=1, bn_leaky=True)
        h = conv2d_pallas(h, pp['c2'], stride=1, pad=1, bn_leaky=True)
        return h

    x_d1 = up(x_d0, x_block3, p['up1'])
    x_d2 = up(x_d1, x_block2, p['up2'])
    x_d3 = up(x_d2, x_block1, p['up3'])
    x_d4 = up(x_d3, x_block0, p['up4'])
    return conv2d_pallas(x_d4, p['conv3'], stride=1, pad=1)


def unet_adaptive_bins_forward(x_nchw, p):
    x = jnp.transpose(x_nchw, (0, 2, 3, 1))                     # NCHW -> NHWC
    feats = synthetic_backend_features(x, p['backend'])
    unet_out = decoder_forward(feats, p)                        # (N, 16, 16, 128)
    # mViT.conv_input (1x1) is folded into the head kernel (commutes with the pool).
    pred = pallas_adabins_head(unet_out, p)                     # (N, 1)
    # torch: pred has shape (N, 1, 1, 1); pred.squeeze(1) -> (N, 1, 1)
    return pred.reshape(pred.shape[0], 1, 1)


if __name__ == "__main__":
    key = jax.random.PRNGKey(0)
    kx, kp = jax.random.split(key)
    x = jax.random.normal(kx, (2, 3, 32, 32), jnp.float32)       # NCHW, like PyTorch
    params = init_params(kp)
    out = unet_adaptive_bins_forward(x, params)
    jax.block_until_ready(out)
    assert out.shape == (2, 1, 1) and out.dtype == jnp.float32
    print("KERNEL_OK")
</pallas_src>

<mosaic_0001>
module attributes {stable_mosaic.version = 11 : i64} {
  func.func @kernel(%arg0: i32, %arg1: i32, %arg2: i32, %arg3: memref<32x2048xbf16, #tpu.memory_space<vmem>>, %arg4: memref<2048x512xbf16, #tpu.memory_space<vmem>>, %arg5: memref<1x512xf32, #tpu.memory_space<vmem>>, %arg6: memref<32x512xf32, #tpu.memory_space<vmem>>, %arg7: memref<32x512xf32, #tpu.memory_space<vmem>>) attributes {dimension_semantics = [#tpu.dimension_semantics<parallel>, #tpu.dimension_semantics<parallel>, #tpu.dimension_semantics<arbitrary>], iteration_bounds = array<i64: 1, 4, 1>, scalar_prefetch = 0 : i64, scratch_operands = 1 : i64, tpu.core_type = #tpu.core_type<tc>, window_params = [{transform_indices = @transform_0, window_bounds = array<i64: 32, 2048>}, {transform_indices = @transform_1, window_bounds = array<i64: 2048, 512>}, {transform_indices = @transform_2, window_bounds = array<i64: 1, 512>}, {transform_indices = @transform_3, window_bounds = array<i64: 32, 512>}]} {
    %c0_i32 = arith.constant 0 : i32
    %0 = arith.cmpi eq, %arg2, %c0_i32 : i32
    %1 = arith.extui %0 : i1 to i32
    %c0_i32_0 = arith.constant 0 : i32
    %2 = arith.cmpi ne, %1, %c0_i32_0 : i32
    scf.if %2 {
      %cst_10 = arith.constant 0.000000e+00 : f32
      %12 = vector.broadcast %cst_10 : f32 to vector<32x512xf32>
      %c0_11 = arith.constant 0 : index
      %c0_12 = arith.constant 0 : index
      %13 = vector.load %arg7[%c0_11, %c0_12] : memref<32x512xf32, #tpu.memory_space<vmem>>, vector<32x512xf32>
      tpu.vector_store %arg7[%c0_11, %c0_12], %12 {strides = array<i32>} : memref<32x512xf32, #tpu.memory_space<vmem>>, vector<32x512xf32>,
    } else {
    }
    %c0 = arith.constant 0 : index
    %c0_1 = arith.constant 0 : index
    %3 = vector.load %arg7[%c0, %c0_1] : memref<32x512xf32, #tpu.memory_space<vmem>>, vector<32x512xf32>
    %c0_2 = arith.constant 0 : index
    %c0_3 = arith.constant 0 : index
    %4 = vector.load %arg3[%c0_2, %c0_3] : memref<32x2048xbf16, #tpu.memory_space<vmem>>, vector<32x2048xbf16>
    %c0_4 = arith.constant 0 : index
    %c0_5 = arith.constant 0 : index
    %5 = vector.load %arg4[%c0_4, %c0_5] : memref<2048x512xbf16, #tpu.memory_space<vmem>>, vector<2048x512xbf16>
    %cst = arith.constant dense<0.000000e+00> : vector<32x512xf32>
    %6 = tpu.matmul %4, %5, %cst {dimension_numbers = #tpu.dot_dimension_numbers<[1], [0], [0], [1], [0, 0, 1, 1], [], []>} : vector<32x2048xbf16>, vector<2048x512xbf16>, vector<32x512xf32> -> vector<32x512xf32>
    %7 = arith.addf %3, %6 : vector<32x512xf32>
    %c0_6 = arith.constant 0 : index
    %c0_7 = arith.constant 0 : index
    %8 = vector.load %arg7[%c0_6, %c0_7] : memref<32x512xf32, #tpu.memory_space<vmem>>, vector<32x512xf32>
    tpu.vector_store %arg7[%c0_6, %c0_7], %7 {strides = array<i32>} : memref<32x512xf32, #tpu.memory_space<vmem>>, vector<32x512xf32>,
    %c0_i32_8 = arith.constant 0 : i32
    %9 = arith.cmpi eq, %arg2, %c0_i32_8 : i32
    %10 = arith.extui %9 : i1 to i32
    %c0_i32_9 = arith.constant 0 : i32
    %11 = arith.cmpi ne, %10, %c0_i32_9 : i32
    scf.if %11 {
      %c0_10 = arith.constant 0 : index
      %c0_11 = arith.constant 0 : index
      %12 = vector.load %arg7[%c0_10, %c0_11] : memref<32x512xf32, #tpu.memory_space<vmem>>, vector<32x512xf32>
      %c0_12 = arith.constant 0 : index
      %c0_13 = arith.constant 0 : index
      %13 = vector.load %arg5[%c0_12, %c0_13] : memref<1x512xf32, #tpu.memory_space<vmem>>, vector<1x512xf32>
      %14 = vector.broadcast %13 : vector<1x512xf32> to vector<32x512xf32>
      %15 = arith.addf %12, %14 : vector<32x512xf32>
      %c0_14 = arith.constant 0 : index
      %c0_15 = arith.constant 0 : index
      %16 = vector.load %arg6[%c0_14, %c0_15] : memref<32x512xf32, #tpu.memory_space<vmem>>, vector<32x512xf32>
      tpu.vector_store %arg6[%c0_14, %c0_15], %15 {strides = array<i32>} : memref<32x512xf32, #tpu.memory_space<vmem>>, vector<32x512xf32>,
    } else {
    }
    return
  }
  func.func @transform_0(%arg0: i32, %arg1: i32, %arg2: i32) -> (i32, i32) {
    %c0_i32 = arith.constant 0 : i32
    return %arg0, %arg2 : i32, i32
  }
  func.func @transform_1(%arg0: i32, %arg1: i32, %arg2: i32) -> (i32, i32) {
    %c0_i32 = arith.constant 0 : i32
    return %arg2, %arg1 : i32, i32
  }
  func.func @transform_2(%arg0: i32, %arg1: i32, %arg2: i32) -> (i32, i32) {
    %c0_i32 = arith.constant 0 : i32
    %c0_i32_0 = arith.constant 0 : i32
    return %c0_i32, %arg1 : i32, i32
  }
  func.func @transform_3(%arg0: i32, %arg1: i32, %arg2: i32) -> (i32, i32) {
    %c0_i32 = arith.constant 0 : i32
    return %arg0, %arg1 : i32, i32
  }
}

</mosaic_0001>

<bundles_post_ra>
// kernel: tpu_custom_call.1
= control target key start
LH: loop header
LB: loop body
LE: loop exit
PB: predicated region body
PF: predicated region fallthrough
CT: control target
= control target key end

     0   :  { %8 = vsyncpa [#allocation4], 0  ;;  %s7383_s0 = inlined_call_operand.hbm [shape: bf16[32,2048], index: 0, kind: input, shape index: {}]   ;;  %s7384_s1 = inlined_call_operand.hbm [shape: bf16[2048,2048], index: 1, kind: input, shape index: {}]   ;;  %s7385_s2 = inlined_call_operand.hbm [shape: f32[1,2048], index: 2, kind: input, shape index: {}]   ;;  %s7386_s3 = inlined_call_operand.hbm [shape: f32[32,2048], index: 3, kind: output, shape index: {}]  }
   0x1   :  { %9 = vsyncpa [#allocation7], 0 }
   0x2   :  { %11 = vsyncpa [#allocation7 + $0x1], 0 }
   0x3   :  { %12 = vsyncpa [#allocation5], 0 }
   0x4   :  { %14 = vsyncpa [#allocation5 + $0x1], 0  ;;  %s6302_s12 = smov 0   ;;  %s6304_s13 = smov 0  }
   0x5   :  { %s6306_s14 = smov 0   ;;  %s6308_s15 = smov 0  }
   0x6   :  { %s6310_s16 = smov 0   ;;  %s6312_s17 = smov 0  }
   0x7 LB: > { %s35_s18 = sadd.s32 1, %s6265_s16  ;;  %s76_s19 = sadd.s32 1, %s6257_s14  ;;  %s6269_s17 = sphi %s6312_s17, %s20_s17   ;;  %s6265_s16 = sphi %s6310_s16, %s7417_s16   ;;  %s6261_s15 = sphi %s6308_s15, %s7416_s15   ;;  %s6257_s14 = sphi %s6306_s14, %s7415_s14   ;;  %s6253_s13 = sphi %s6304_s13, %s7414_s13   ;;  %s6249_s12 = sphi %s6302_s12, %s7413_s12  }
   0x8   : > { %p37_p0 = scmp.ge.s32.totalorder %s35_s18, 4  ;;  %p83_p1 = scmp.ne.s32.totalorder %s6257_s14, %s6253_s13 }
   0x9   : > { %p84_p2 = scmp.eq.s32.totalorder %s6269_s17, 0  ;;  %p5276_p4 = scmp.lt.s32.totalorder %s6269_s17, 4 }
   0xa   : > { %s7419_s18 = smov (%p37_p0, %s35_s18), 0  ;;  %s186_s21 = sand.u32 1, %s6269_s17  }
   0xb   : > { %p85_p3 = por %p84_p2, %p83_p1  ;;  %s72_s20 = ssub.s32 %s6265_s16, %s7419_s18 }
   0xc   : > { %p74_p5 = scmp.eq.s32.totalorder %s72_s20, 0  ;;  %s188_s22 = sand.u32 1, %s6257_s14  }
   0xd   : > { %s4687_s24 = sshll.u32 %s188_s22, 12  ;;  %s5247_s25 = sshll.u32 %s6265_s16, 8 }
   0xe   : > { %s6348_s23 = scalar_select %p74_p5, %s6257_s14, %s76_s19  }
   0xf   : > { %s199_s28 = scalar_lea.hbm %s7384_s1, %s5247_s25  ;;  %s190_s29 = scalar_lea.vmem [#allocation6], %s4687_s24 }
  0x10   : > { %s200_s30 = sshll.u32 %s190_s29, 4  ;;  %p6356_p6 = pnand %p5276_p4, %p85_p3  ;;  %s201_s30 = int_to_ptr.vmem [resolvable:$true] %s200_s30 }
  0x11   : > { %s6360_s5 = scalar_lea.sflag [#allocation7], %s186_s21  ;;  %s6116_s6 = scalar_lea.vmem %s201_s30, 65536 }
  0x12   : > { %p7387_p7 = pneg %p6356_p6  ;;  %p6117_p8 = scmp.ne.s32.totalorder %s201_s30, %s6116_s6 }
  0x13   : > { %s6271_s7 = smov [#allocation6]  }
  0x14   : > { %p6119_p9 = pnand %p6117_p8, %p7387_p7  ;;  %s6121_s8 = sshll.u32 %s6271_s7, 4  ;;  %s6122_s8 = int_to_ptr.vmem [resolvable:$false] %s6121_s8 }
  0x15   : > { %s6123_s9 = scalar_lea.vmem %s6122_s8, 131072  ;;  %p6124_p11 = scmp.lt.s32.totalorder %s201_s30, %s6122_s8 }
  0x16   : > { %p6120_p10 = pneg %p6119_p9  ;;  %p6125_p12 = scmp.lt.s32.totalorder %s6123_s9, %s6116_s6 }
  0x18   : > { %p6126_p13 = por %p6125_p12, %p6124_p11 }
  0x1a   : > { %p6127_p0 = pnand %p6126_p13, %p6120_p10 }
  0x1c   : > { %6130 = shalt.err (!%p6127_p0)
}
  0x1d   : > { %s6272_s10 = smov 1024   ;;  %s6273_s11 = smov 256  }
  0x1e   : > { %s6274_s19 = smov 16   ;;  %s6372_s20 = sadd.s32 4294967295, %s6269_s17  }
  0x1f   : > { %5267 = dma.hbm_to_vmem [thread:$0]  (!%p6356_p6), %s199_s28, 65536, %s201_s30, %s6360_s5, %s6272_s10, %s6273_s11, %s6274_s19  }
  0x20   : > { %s4683_s21 = sadd.s32 4294967294, %s6269_s17   ;;  %p89_p2 = scmp.ne.s32.totalorder %s6253_s13, %s6249_s12 }
  0x21   : > { %p90_p3 = scmp.eq.s32.totalorder %s6372_s20, 0  ;;  %p141_p4 = scmp.eq.s32.totalorder %s6372_s20, 3 }
  0x22   : > { %p147_p5 = scmp.eq.s32.totalorder %s4683_s21, 3  ;;  %p4684_p9 = scmp.ge.s32.totalorder %s6269_s17, 1 }
  0x23   : > { %p6381_p8 = por %p90_p3, %p89_p2  ;;  %p6389_p10 = por %p141_p4, %p83_p1 }
  0x24   : > { %p6393_p11 = por %p147_p5, %p89_p2  ;;  %p154_p12 = scmp.lt.s32.totalorder %s6269_s17, 5 }
  0x25   : > { %s7396_s25 = scalar_select %p6389_p10, 1, 0 }
  0x26   : > { %s7397_s26 = scalar_select %p6393_p11, 1, 0 }
  0x27   : > { %p6398_p13 = pnand %p4684_p9, %p154_p12  ;;  %s6275_s28 = smov [#allocation3]  }
  0x28   : > { %s172_s29 = sshll.u32 %s6275_s28, 4  ;;  %s4690_s30 = sshll.u32 %s188_s22, 2  ;;  %s173_s29 = int_to_ptr.vmem [resolvable:$true] %s172_s29 }
  0x29   : > { %p5260_p0 = pneg %p6398_p13  ;;  %s5248_s6 = sshll.u32 %s6265_s16, 6 }
  0x2a   : > { %s214_s7 = scalar_lea.vmem [#allocation8], %s4690_s30  ;;  %s220_s21 = scalar_lea.hbm %s7385_s2, %s5248_s6 }
  0x2b   : > { %s222_s8 = sshll.u32 %s214_s7, 4  ;;  %p6409_p1 = pnand %p5260_p0, %p90_p3  ;;  %s223_s8 = int_to_ptr.vmem [resolvable:$true] %s222_s8 }
  0x2c   : > { %s6142_s22 = scalar_lea.vmem %s173_s29, 4096  ;;  %p6150_p12 = scmp.lt.s32.totalorder %s173_s29, %s173_s29 }
  0x2d   : > { %p6133_p2 = pneg %p6409_p1  ;;  %p6143_p4 = scmp.ne.s32.totalorder %s173_s29, %s6142_s22 }
  0x2e   : > { %p6151_p7 = scmp.lt.s32.totalorder %s6142_s22, %s6142_s22 }
  0x2f   : > { %p6145_p5 = pnand %p6143_p4, %p6133_p2 }
  0x30   : > { %p6152_p11 = por %p6151_p7, %p6150_p12 }
  0x31   : > { %p6146_p9 = pneg %p6145_p5 }
  0x33   : > { %p6153_p10 = pnand %p6152_p11, %p6146_p9 }
  0x35   : > { %6156 = shalt.err (!%p6153_p10)
}
  0x36   : > { %s6276_s28 = smov 64   ;;  %s6170_s6 = scalar_lea.vmem %s223_s8, 64 }
  0x37   : > { %5263 = dma.hbm_to_vmem [thread:$0]  (!%p6409_p1), %s7383_s0, 4096, %s173_s29, [#allocation4], %s6272_s10, %s6272_s10, %s6276_s28  }
  0x38   : > { %p6171_p0 = scmp.ne.s32.totalorder %s223_s8, %s6170_s6  ;;  %p7400_p2 = pneg %p6356_p6 }
  0x39   : > { %s6277_s11 = smov [#allocation8]  }
  0x3a   : > { %p6173_p4 = pnand %p6171_p0, %p7400_p2  ;;  %s6175_s19 = sshll.u32 %s6277_s11, 4  ;;  %s6176_s19 = int_to_ptr.vmem [resolvable:$false] %s6175_s19 }
  0x3b   : > { %s6177_s22 = scalar_lea.vmem %s6176_s19, 128  ;;  %p6178_p7 = scmp.lt.s32.totalorder %s223_s8, %s6176_s19 }
  0x3c   : > { %p6174_p5 = pneg %p6173_p4  ;;  %p6179_p10 = scmp.lt.s32.totalorder %s6177_s22, %s6170_s6 }
  0x3e   : > { %p6180_p11 = por %p6179_p10, %p6178_p7 }
  0x40   : > { %p6181_p9 = pnand %p6180_p11, %p6174_p5 }
  0x42   : > { %6184 = shalt.err (!%p6181_p9)
}
  0x43   : > { %5270 = dma.hbm_to_vmem [thread:$0]  (!%p6356_p6), %s220_s21, 64, %s223_s8, %s6360_s5  }
  0x44   : > { %231 = sbr.rel (%p6398_p13) target bundleno = 820 (0x334), region = 32 }
  0x49   : > { %6236 = dma.done.wait (%p90_p3), [#allocation4], 4096  }
  0x4a   : > { %6238 = vsyncadd (%p90_p3), [#allocation4], 4294963200  ;;  %s237_s10 = sand.u32 1, %s6372_s20   ;;  %s6439_s29 = sand.u32 1, %s6253_s13  }
  0x4b   : > { %s4695_s9 = sshll.u32 %s6439_s29, 12  ;;  %s238_s4 = scalar_lea.sflag [#allocation7], %s237_s10 }
  0x4c   : > { %s6442_s28 = scalar_lea.vmem [#allocation6], %s4695_s9 }
  0x4d   : > { %6240 = dma.done.wait (%p6381_p8), %s238_s4, 65600  }
  0x4e   : > { %6242 = vsyncadd (%p6381_p8), %s238_s4, 4294901696  ;;  %v5335_v0 = vld [vmem:[%s6442_s28 + $0xe4] ss:$16 sps:$4 sm:$0xff]   ;;  %v5339_v2 = vld [vmem:[%s6442_s28 + $0xe0] ss:$16 sps:$4 sm:$0xff]   ;;  %s4696_s5 = sshll.u32 %s6439_s29, 2 }
  0x4f   : > { %v5337_v1 = vld [vmem:[%s6442_s28 + $0x2e4] ss:$16 sps:$4 sm:$0xff]   ;;  %3585 = vmatprep.subr.bf16.mxu0 %v5335_v0  ;;  %v5340_v3 = vld [vmem:[%s6442_s28 + $0x2e0] ss:$16 sps:$4 sm:$0xff]   ;;  %v322_v50 = vld [vmem:[#allocation3 + $0x8] sm:$0xff]  ;;  %s250_s20 = scalar_lea.vmem [#allocation8], %s4696_s5 }
  0x50   : > { %3638 = vmatprep.subr.bf16.mxu1 %v5337_v1  ;;  %v5341_v4 = vld [vmem:[%s6442_s28 + $0xc4] ss:$16 sps:$4 sm:$0xff]   ;;  %3586 = vmatpush1.bf16.msra.mxu0 %v5339_v2  ;;  %v5345_v6 = vld [vmem:[%s6442_s28 + $0xc0] ss:$16 sps:$4 sm:$0xff]   ;;  %v330_v51 = vld [vmem:[#allocation3 + $0x48] sm:$0xff]  ;;  %s4697_s24 = sshll.u32 %s6439_s29, 7 }
  0x51   : > { %3639 = vmatpush1.bf16.msra.mxu1 %v5340_v3  ;;  %v5343_v5 = vld [vmem:[%s6442_s28 + $0x2c4] ss:$16 sps:$4 sm:$0xff]   ;;  %3587 = vmatprep.subr.bf16.mxu0 %v5341_v4  ;;  %v5346_v7 = vld [vmem:[%s6442_s28 + $0x2c0] ss:$16 sps:$4 sm:$0xff]   ;;  %v6500_v55 = vcombine.high %v322_v50, %v330_v51  ;;  %s7233_s27 = scalar_lea.vmem [#allocation9], %s4697_s24  ;;  %s5249_s8 = sshll.u32 %s6261_s15, 9 }
  0x52   : > { %3640 = vmatprep.subr.bf16.mxu1 %v5343_v5  ;;  %v5347_v8 = vld [vmem:[%s6442_s28 + $0xa4] ss:$16 sps:$4 sm:$0xff]   ;;  %v5351_v10 = vld [vmem:[%s6442_s28 + $0xa0] ss:$16 sps:$4 sm:$0xff]   ;;  %s4555_s21 = sshll.u32 %s7233_s27, 4  ;;  %s7332_s6 = scalar_lea.hbm %s7386_s3, %s5249_s8  ;;  %s7334_s21 = int_to_ptr.vmem [resolvable:$true] %s4555_s21 }
  0x53   : > { %v5349_v9 = vld [vmem:[%s6442_s28 + $0x2a4] ss:$16 sps:$4 sm:$0xff]   ;;  %v5352_v11 = vld [vmem:[%s6442_s28 + $0x2a0] ss:$16 sps:$4 sm:$0xff]   ;;  %3670 = vmatprep.mubr.bf16.mxu1 %v6500_v55  ;;  %s4539_s15 = scalar_lea.sflag [#allocation5], %s6439_s29  ;;  %s6185_s11 = scalar_lea.vmem %s7334_s21, 2048 }
  0x54   : > { %3588 = vmatpush1.bf16.msra.mxu0 %v5345_v6  ;;  %v5353_v12 = vld [vmem:[%s6442_s28 + $0x84] ss:$16 sps:$4 sm:$0xff]   ;;  %v5357_v14 = vld [vmem:[%s6442_s28 + $0x80] ss:$16 sps:$4 sm:$0xff]   ;;  %p6186_p6 = scmp.ne.s32.totalorder %s7334_s21, %s6185_s11  ;;  %p7411_p3 = scmp.ne.s32.totalorder %s7396_s25, 0 }
  0x55   : > { %3641 = vmatpush1.bf16.msra.mxu1 %v5346_v7  ;;  %3589 = vmatprep.subr.bf16.mxu0 %v5347_v8  ;;  %v5355_v13 = vld [vmem:[%s6442_s28 + $0x284] ss:$16 sps:$4 sm:$0xff]   ;;  %v5358_v15 = vld [vmem:[%s6442_s28 + $0x280] ss:$16 sps:$4 sm:$0xff]   ;;  %s6278_s19 = smov [#allocation9]  }
  0x56   : > { %3642 = vmatprep.subr.bf16.mxu1 %v5349_v9  ;;  %v5359_v16 = vld [vmem:[%s6442_s28 + $0x64] ss:$16 sps:$4 sm:$0xff]   ;;  %v5363_v18 = vld [vmem:[%s6442_s28 + $0x60] ss:$16 sps:$4 sm:$0xff]   ;;  %v6522_v9 = vcombine.low %v322_v50, %v330_v51  ;;  %v6576_v50 = vld [vmem:[#allocation3 + $0x58] sm:$0xff]  ;;  %p6187_p8 = pnand %p6186_p6, %p7411_p3  ;;  %s6189_s22 = sshll.u32 %s6278_s19, 4  ;;  %s6190_s22 = int_to_ptr.vmem [resolvable:$false] %s6189_s22 }
  0x57   : > { %v5361_v17 = vld [vmem:[%s6442_s28 + $0x264] ss:$16 sps:$4 sm:$0xff]   ;;  %v5364_v19 = vld [vmem:[%s6442_s28 + $0x260] ss:$16 sps:$4 sm:$0xff]   ;;  %s6191_s10 = scalar_lea.vmem %s6190_s22, 4096  ;;  %p6192_p1 = scmp.lt.s32.totalorder %s7334_s21, %s6190_s22 }
  0x58   : > { %3590 = vmatpush1.bf16.msra.mxu0 %v5351_v10  ;;  %v5365_v20 = vld [vmem:[%s6442_s28 + $0x44] ss:$16 sps:$4 sm:$0xff]   ;;  %v5369_v22 = vld [vmem:[%s6442_s28 + $0x40] ss:$16 sps:$4 sm:$0xff]   ;;  %p6188_p13 = pneg %p6187_p8  ;;  %p6193_p12 = scmp.lt.s32.totalorder %s6191_s10, %s6185_s11 }
  0x59   : > { %3643 = vmatpush1.bf16.msra.mxu1 %v5352_v11  ;;  %3591 = vmatprep.subr.bf16.mxu0 %v5353_v12  ;;  %v5367_v21 = vld [vmem:[%s6442_s28 + $0x244] ss:$16 sps:$4 sm:$0xff]   ;;  %v5370_v23 = vld [vmem:[%s6442_s28 + $0x240] ss:$16 sps:$4 sm:$0xff]  }
  0x5a   : > { %3644 = vmatprep.subr.bf16.mxu1 %v5355_v13  ;;  %v5371_v24 = vld [vmem:[%s6442_s28 + $0x24] ss:$16 sps:$4 sm:$0xff]   ;;  %v5375_v26 = vld [vmem:[%s6442_s28 + $0x20] ss:$16 sps:$4 sm:$0xff]   ;;  %p6194_p0 = por %p6193_p12, %p6192_p1 }
  0x5b   : > { %v5373_v25 = vld [vmem:[%s6442_s28 + $0x224] ss:$16 sps:$4 sm:$0xff]   ;;  %v5376_v27 = vld [vmem:[%s6442_s28 + $0x220] ss:$16 sps:$4 sm:$0xff]  }
  0x5c   : > { %3592 = vmatpush1.bf16.msra.mxu0 %v5357_v14  ;;  %v5377_v28 = vld [vmem:[%s6442_s28 + $0x4] ss:$16 sps:$4 sm:$0xff]   ;;  %v5381_v30 = vld [vmem:[%s6442_s28] ss:$16 sps:$4 sm:$0xff]   ;;  %p6195_p2 = pnand %p6194_p0, %p6188_p13 }
  0x5d   : > { %3645 = vmatpush1.bf16.msra.mxu1 %v5358_v15  ;;  %3593 = vmatprep.subr.bf16.mxu0 %v5359_v16  ;;  %v5379_v29 = vld [vmem:[%s6442_s28 + $0x204] ss:$16 sps:$4 sm:$0xff]   ;;  %v5382_v31 = vld [vmem:[%s6442_s28 + $0x200] ss:$16 sps:$4 sm:$0xff]  }
  0x5e   : > { %3646 = vmatprep.subr.bf16.mxu1 %v5361_v17  ;;  %v5383_v32 = vld [vmem:[%s6442_s28 + $0x1e4] ss:$16 sps:$4 sm:$0xff]   ;;  %v5387_v34 = vld [vmem:[%s6442_s28 + $0x1e0] ss:$16 sps:$4 sm:$0xff]  }
  0x5f   : > { %v5385_v33 = vld [vmem:[%s6442_s28 + $0x3e4] ss:$16 sps:$4 sm:$0xff]   ;;  %v5388_v35 = vld [vmem:[%s6442_s28 + $0x3e0] ss:$16 sps:$4 sm:$0xff]  }
  0x60   : > { %3594 = vmatpush1.bf16.msra.mxu0 %v5363_v18  ;;  %v5389_v36 = vld [vmem:[%s6442_s28 + $0x1c4] ss:$16 sps:$4 sm:$0xff]   ;;  %v5393_v38 = vld [vmem:[%s6442_s28 + $0x1c0] ss:$16 sps:$4 sm:$0xff]  }
  0x61   : > { %3647 = vmatpush1.bf16.msra.mxu1 %v5364_v19  ;;  %3595 = vmatprep.subr.bf16.mxu0 %v5365_v20  ;;  %v5391_v37 = vld [vmem:[%s6442_s28 + $0x3c4] ss:$16 sps:$4 sm:$0xff]   ;;  %v5394_v39 = vld [vmem:[%s6442_s28 + $0x3c0] ss:$16 sps:$4 sm:$0xff]  }
  0x62   : > { %3648 = vmatprep.subr.bf16.mxu1 %v5367_v21  ;;  %v5395_v40 = vld [vmem:[%s6442_s28 + $0x1a4] ss:$16 sps:$4 sm:$0xff]   ;;  %v5399_v42 = vld [vmem:[%s6442_s28 + $0x1a0] ss:$16 sps:$4 sm:$0xff]  }
  0x63   : > { %v5397_v41 = vld [vmem:[%s6442_s28 + $0x3a4] ss:$16 sps:$4 sm:$0xff]   ;;  %v5400_v43 = vld [vmem:[%s6442_s28 + $0x3a0] ss:$16 sps:$4 sm:$0xff]  }
  0x64   : > { %3596 = vmatpush1.bf16.msra.mxu0 %v5369_v22  ;;  %v5401_v44 = vld [vmem:[%s6442_s28 + $0x184] ss:$16 sps:$4 sm:$0xff]   ;;  %v5405_v46 = vld [vmem:[%s6442_s28 + $0x180] ss:$16 sps:$4 sm:$0xff]  }
  0x65   : > { %3649 = vmatpush1.bf16.msra.mxu1 %v5370_v23  ;;  %3597 = vmatprep.subr.bf16.mxu0 %v5371_v24  ;;  %v5403_v45 = vld [vmem:[%s6442_s28 + $0x384] ss:$16 sps:$4 sm:$0xff]   ;;  %v5406_v47 = vld [vmem:[%s6442_s28 + $0x380] ss:$16 sps:$4 sm:$0xff]  }
  0x66   : > { %3650 = vmatprep.subr.bf16.mxu1 %v5373_v25  ;;  %v321_v48 = vld [vmem:[#allocation3] sm:$0xff] }
  0x67   : > { %v329_v49 = vld [vmem:[#allocation3 + $0x40] sm:$0xff] }
  0x68   : > { %3598 = vmatpush1.bf16.msra.mxu0 %v5375_v26  ;;  %v5407_v52 = vld [vmem:[%s6442_s28 + $0x164] ss:$16 sps:$4 sm:$0xff]   ;;  %v6497_v53 = vcombine.high %v321_v48, %v329_v49  ;;  %v5411_v56 = vld [vmem:[%s6442_s28 + $0x160] ss:$16 sps:$4 sm:$0xff]   ;;  %v6520_v8 = vcombine.low %v321_v48, %v329_v49  ;;  %v6570_v48 = vld [vmem:[#allocation3 + $0x18] sm:$0xff] }
  0x69   : > { %3651 = vmatpush1.bf16.msra.mxu1 %v5376_v27  ;;  %3599 = vmatprep.subr.bf16.mxu0 %v5377_v28  ;;  %v5409_v54 = vld [vmem:[%s6442_s28 + $0x364] ss:$16 sps:$4 sm:$0xff]   ;;  %v5412_v57 = vld [vmem:[%s6442_s28 + $0x360] ss:$16 sps:$4 sm:$0xff]   ;;  %v6580_v51 = vcombine.high %v6570_v48, %v6576_v50 }
  0x6a   : > { %3652 = vmatprep.subr.bf16.mxu1 %v5379_v29  ;;  %3617 = vmatprep.mubr.bf16.mxu0 %v6497_v53  ;;  %v5413_v58 = vld [vmem:[%s6442_s28 + $0x144] ss:$16 sps:$4 sm:$0xff]   ;;  %v5417_v60 = vld [vmem:[%s6442_s28 + $0x140] ss:$16 sps:$4 sm:$0xff]  }
  0x6b   : > { %v5415_v59 = vld [vmem:[%s6442_s28 + $0x344] ss:$16 sps:$4 sm:$0xff]   ;;  %v5418_v61 = vld [vmem:[%s6442_s28 + $0x340] ss:$16 sps:$4 sm:$0xff]  }
  0x6c   : > { %3600 = vmatpush1.bf16.msra.mxu0 %v5381_v30  ;;  %v5419_v62 = vld [vmem:[%s6442_s28 + $0x124] ss:$16 sps:$4 sm:$0xff]   ;;  %v5423_v0 = vld [vmem:[%s6442_s28 + $0x120] ss:$16 sps:$4 sm:$0xff]   ;;  %v338_v30 = vld [vmem:[#allocation3 + $0x88] sm:$0xff] }
  0x6d   : > { %3653 = vmatpush1.bf16.msra.mxu1 %v5382_v31  ;;  %3601 = vmatprep.subr.bf16.mxu0 %v5383_v32  ;;  %v5421_v63 = vld [vmem:[%s6442_s28 + $0x324] ss:$16 sps:$4 sm:$0xff]   ;;  %v5424_v1 = vld [vmem:[%s6442_s28 + $0x320] ss:$16 sps:$4 sm:$0xff]   ;;  %v346_v31 = vld [vmem:[#allocation3 + $0xc8] sm:$0xff] }
  0x6e   : > { %3654 = vmatprep.subr.bf16.mxu1 %v5385_v33  ;;  %v5425_v2 = vld [vmem:[%s6442_s28 + $0x104] ss:$16 sps:$4 sm:$0xff]   ;;  %v5429_v4 = vld [vmem:[%s6442_s28 + $0x100] ss:$16 sps:$4 sm:$0xff]  }
  0x6f   : > { %v5427_v3 = vld [vmem:[%s6442_s28 + $0x304] ss:$16 sps:$4 sm:$0xff]   ;;  %v5430_v5 = vld [vmem:[%s6442_s28 + $0x300] ss:$16 sps:$4 sm:$0xff]  }
  0x70   : > { %3602 = vmatpush2.bf16.msra.mxu0 %v5387_v34  ;;  %v5433_v6 = vld [vmem:[%s6442_s28 + $0x4e4] ss:$16 sps:$4 sm:$0xff]   ;;  %v5431_v10 = vld [vmem:[%s6442_s28 + $0x4e0] ss:$16 sps:$4 sm:$0xff]   ;;  %v6547_v34 = vcombine.high %v338_v30, %v346_v31 }
  0x71   : > { %3655 = vmatpush2.bf16.msra.mxu1 %v5388_v35  ;;  %3603 = vmatprep.subr.bf16.mxu0 %v5389_v36  ;;  %v5436_v7 = vld [vmem:[%s6442_s28 + $0x6e4] ss:$16 sps:$4 sm:$0xff]   ;;  %v5434_v11 = vld [vmem:[%s6442_s28 + $0x6e0] ss:$16 sps:$4 sm:$0xff]  }
  0x72   : > { %3656 = vmatprep.subr.bf16.mxu1 %v5391_v37  ;;  %v5439_v12 = vld [vmem:[%s6442_s28 + $0x4c4] ss:$16 sps:$4 sm:$0xff]   ;;  %v5437_v14 = vld [vmem:[%s6442_s28 + $0x4c0] ss:$16 sps:$4 sm:$0xff]   ;;  %v6552_v37 = vcombine.low %v338_v30, %v346_v31 }
  0x73   : > { %v5442_v13 = vld [vmem:[%s6442_s28 + $0x6c4] ss:$16 sps:$4 sm:$0xff]   ;;  %v5440_v15 = vld [vmem:[%s6442_s28 + $0x6c0] ss:$16 sps:$4 sm:$0xff]  }
  0x74   : > { %3604 = vmatpush2.bf16.msra.mxu0 %v5393_v38  ;;  %v5445_v16 = vld [vmem:[%s6442_s28 + $0x4a4] ss:$16 sps:$4 sm:$0xff]   ;;  %v5443_v18 = vld [vmem:[%s6442_s28 + $0x4a0] ss:$16 sps:$4 sm:$0xff]  }
  0x75   : > { %3657 = vmatpush2.bf16.msra.mxu1 %v5394_v39  ;;  %3605 = vmatprep.subr.bf16.mxu0 %v5395_v40  ;;  %v5448_v17 = vld [vmem:[%s6442_s28 + $0x6a4] ss:$16 sps:$4 sm:$0xff]   ;;  %v5446_v19 = vld [vmem:[%s6442_s28 + $0x6a0] ss:$16 sps:$4 sm:$0xff]  }
  0x76   : > { %3658 = vmatprep.subr.bf16.mxu1 %v5397_v41  ;;  %v5451_v20 = vld [vmem:[%s6442_s28 + $0x484] ss:$16 sps:$4 sm:$0xff]   ;;  %v5449_v22 = vld [vmem:[%s6442_s28 + $0x480] ss:$16 sps:$4 sm:$0xff]  }
  0x77   : > { %v5454_v21 = vld [vmem:[%s6442_s28 + $0x684] ss:$16 sps:$4 sm:$0xff]   ;;  %v5452_v23 = vld [vmem:[%s6442_s28 + $0x680] ss:$16 sps:$4 sm:$0xff]  }
  0x78   : > { %3606 = vmatpush2.bf16.msra.mxu0 %v5399_v42  ;;  %v5457_v24 = vld [vmem:[%s6442_s28 + $0x464] ss:$16 sps:$4 sm:$0xff]   ;;  %v5455_v26 = vld [vmem:[%s6442_s28 + $0x460] ss:$16 sps:$4 sm:$0xff]  }
  0x79   : > { %3659 = vmatpush2.bf16.msra.mxu1 %v5400_v43  ;;  %3607 = vmatprep.subr.bf16.mxu0 %v5401_v44  ;;  %v5460_v25 = vld [vmem:[%s6442_s28 + $0x664] ss:$16 sps:$4 sm:$0xff]   ;;  %v5458_v27 = vld [vmem:[%s6442_s28 + $0x660] ss:$16 sps:$4 sm:$0xff]  }
  0x7a   : > { %3660 = vmatprep.subr.bf16.mxu1 %v5403_v45  ;;  %v337_v28 = vld [vmem:[#allocation3 + $0x80] sm:$0xff]  ;;  %v339_v30 = vld [vmem:[#allocation3 + $0x90] sm:$0xff] }
  0x7b   : > { %v345_v29 = vld [vmem:[#allocation3 + $0xc0] sm:$0xff]  ;;  %v347_v31 = vld [vmem:[#allocation3 + $0xd0] sm:$0xff] }
  0x7c   : > { %3608 = vmatpush2.bf16.msra.mxu0 %v5405_v46  ;;  %v5463_v32 = vld [vmem:[%s6442_s28 + $0x444] ss:$16 sps:$4 sm:$0xff]   ;;  %v6545_v33 = vcombine.high %v337_v28, %v345_v29  ;;  %v6549_v35 = vcombine.low %v337_v28, %v345_v29  ;;  %v5461_v38 = vld [vmem:[%s6442_s28 + $0x440] ss:$16 sps:$4 sm:$0xff]  }
  0x7d   : > { %3661 = vmatpush2.bf16.msra.mxu1 %v5406_v47  ;;  %3609 = vmatprep.subr.bf16.mxu0 %v5407_v52  ;;  %v5466_v36 = vld [vmem:[%s6442_s28 + $0x644] ss:$16 sps:$4 sm:$0xff]   ;;  %v5464_v39 = vld [vmem:[%s6442_s28 + $0x640] ss:$16 sps:$4 sm:$0xff]  }
  0x7e   : > { %3662 = vmatprep.subr.bf16.mxu1 %v5409_v54  ;;  %v5469_v40 = vld [vmem:[%s6442_s28 + $0x424] ss:$16 sps:$4 sm:$0xff]   ;;  %v5467_v42 = vld [vmem:[%s6442_s28 + $0x420] ss:$16 sps:$4 sm:$0xff]  }
  0x7f   : > { %v5472_v41 = vld [vmem:[%s6442_s28 + $0x624] ss:$16 sps:$4 sm:$0xff]   ;;  %v5470_v43 = vld [vmem:[%s6442_s28 + $0x620] ss:$16 sps:$4 sm:$0xff]  }
  0x80   : > { %3610 = vmatpush2.bf16.msra.mxu0 %v5411_v56  ;;  %v5475_v44 = vld [vmem:[%s6442_s28 + $0x404] ss:$16 sps:$4 sm:$0xff]   ;;  %v5473_v52 = vld [vmem:[%s6442_s28 + $0x400] ss:$16 sps:$4 sm:$0xff]  }
  0x81   : > { %3663 = vmatpush2.bf16.msra.mxu1 %v5412_v57  ;;  %3611 = vmatprep.subr.bf16.mxu0 %v5413_v58  ;;  %v5478_v45 = vld [vmem:[%s6442_s28 + $0x604] ss:$16 sps:$4 sm:$0xff]   ;;  %v5476_v54 = vld [vmem:[%s6442_s28 + $0x600] ss:$16 sps:$4 sm:$0xff]  }
  0x82   : > { %3664 = vmatprep.subr.bf16.mxu1 %v5415_v59  ;;  %v6566_v46 = vld [vmem:[#allocation3 + $0x10] sm:$0xff] }
  0x83   : > { %v6568_v47 = vld [vmem:[#allocation3 + $0x50] sm:$0xff] }
  0x84   : > { %3612 = vmatpush2.bf16.msra.mxu0 %v5417_v60  ;;  %v6574_v49 = vcombine.high %v6566_v46, %v6568_v47  ;;  %v5481_v56 = vld [vmem:[%s6442_s28 + $0x5e4] ss:$16 sps:$4 sm:$0xff]   ;;  %v5479_v58 = vld [vmem:[%s6442_s28 + $0x5e0] ss:$16 sps:$4 sm:$0xff]  }
  0x85   : > { %3665 = vmatpush2.bf16.msra.mxu1 %v5418_v61  ;;  %3613 = vmatprep.subr.bf16.mxu0 %v5419_v62  ;;  %v5484_v57 = vld [vmem:[%s6442_s28 + $0x7e4] ss:$16 sps:$4 sm:$0xff]   ;;  %v5482_v59 = vld [vmem:[%s6442_s28 + $0x7e0] ss:$16 sps:$4 sm:$0xff]  }
  0x86   : > { %3666 = vmatprep.subr.bf16.mxu1 %v5421_v63  ;;  %v5487_v60 = vld [vmem:[%s6442_s28 + $0x5c4] ss:$16 sps:$4 sm:$0xff]   ;;  %v5485_v62 = vld [vmem:[%s6442_s28 + $0x5c0] ss:$16 sps:$4 sm:$0xff]  }
  0x87   : > { %v5490_v61 = vld [vmem:[%s6442_s28 + $0x7c4] ss:$16 sps:$4 sm:$0xff]   ;;  %v5488_v63 = vld [vmem:[%s6442_s28 + $0x7c0] ss:$16 sps:$4 sm:$0xff]  }
  0x88   : > { %3614 = vmatpush2.bf16.msra.mxu0 %v5423_v0  ;;  %v5493_v0 = vld [vmem:[%s6442_s28 + $0x5a4] ss:$16 sps:$4 sm:$0xff]   ;;  %v5527_v28 = vld [vmem:[%s6442_s28 + $0x8e0] ss:$16 sps:$4 sm:$0xff]  }
  0x89   : > { %3667 = vmatpush2.bf16.msra.mxu1 %v5424_v1  ;;  %3615 = vmatprep.subr.bf16.mxu0 %v5425_v2  ;;  %v5496_v1 = vld [vmem:[%s6442_s28 + $0x7a4] ss:$16 sps:$4 sm:$0xff]   ;;  %v5491_v2 = vld [vmem:[%s6442_s28 + $0x5a0] ss:$16 sps:$4 sm:$0xff]  }
  0x8a   : > { %3668 = vmatprep.subr.bf16.mxu1 %v5427_v3  ;;  %v5494_v3 = vld [vmem:[%s6442_s28 + $0x7a0] ss:$16 sps:$4 sm:$0xff]  }
  0x8b   : > { %v5530_v29 = vld [vmem:[%s6442_s28 + $0xae0] ss:$16 sps:$4 sm:$0xff]  }
  0x8c   : > { %3616 = vmatpush2.bf16.msra.mxu0 %v5429_v4  ;;  %v5499_v4 = vld [vmem:[%s6442_s28 + $0x584] ss:$16 sps:$4 sm:$0xff]  }
  0x8d   : > { %3669 = vmatpush2.bf16.msra.mxu1 %v5430_v5  ;;  %3691 = vmatprep.subr.bf16.mxu0 %v5433_v6  ;;  %v5502_v5 = vld [vmem:[%s6442_s28 + $0x784] ss:$16 sps:$4 sm:$0xff]   ;;  %v5497_v6 = vld [vmem:[%s6442_s28 + $0x580] ss:$16 sps:$4 sm:$0xff]  }
  0x8e   : > { %3744 = vmatprep.subr.bf16.mxu1 %v5436_v7  ;;  %v5500_v7 = vld [vmem:[%s6442_s28 + $0x780] ss:$16 sps:$4 sm:$0xff]  }
  0x8f   : > { %3618 = vmatmul.mubr.bf16.vlgmr.msra.gmra.mxu0 %v6520_v8 }
  0x90   : > { %3671 = vmatmul.mubr.bf16.vlgmr.msra.gmra.mxu1 %v6522_v9  ;;  %3692 = vmatpush1.bf16.msra.mxu0 %v5431_v10  ;;  %v5505_v10 = vld [vmem:[%s6442_s28 + $0x564] ss:$16 sps:$4 sm:$0xff]  }
  0x91   : > { %3745 = vmatpush1.bf16.msra.mxu1 %v5434_v11  ;;  %3693 = vmatprep.subr.bf16.mxu0 %v5439_v12  ;;  %v5508_v11 = vld [vmem:[%s6442_s28 + $0x764] ss:$16 sps:$4 sm:$0xff]   ;;  %v5503_v12 = vld [vmem:[%s6442_s28 + $0x560] ss:$16 sps:$4 sm:$0xff]  }
  0x92   : > { %3746 = vmatprep.subr.bf16.mxu1 %v5442_v13  ;;  %3627 = vmatprep.mubr.bf16.mxu0 %v6545_v33  ;;  %v5506_v13 = vld [vmem:[%s6442_s28 + $0x760] ss:$16 sps:$4 sm:$0xff]  }
  0x93   : > { %3680 = vmatprep.mubr.bf16.mxu1 %v6547_v34 }
  0x94   : > { %3694 = vmatpush1.bf16.msra.mxu0 %v5437_v14  ;;  %v5511_v14 = vld [vmem:[%s6442_s28 + $0x544] ss:$16 sps:$4 sm:$0xff]  }
  0x95   : > { %3747 = vmatpush1.bf16.msra.mxu1 %v5440_v15  ;;  %3695 = vmatprep.subr.bf16.mxu0 %v5445_v16  ;;  %v5514_v15 = vld [vmem:[%s6442_s28 + $0x744] ss:$16 sps:$4 sm:$0xff]   ;;  %v5509_v16 = vld [vmem:[%s6442_s28 + $0x540] ss:$16 sps:$4 sm:$0xff]  }
  0x96   : > { %3748 = vmatprep.subr.bf16.mxu1 %v5448_v17  ;;  %v5512_v17 = vld [vmem:[%s6442_s28 + $0x740] ss:$16 sps:$4 sm:$0xff]  }
  0x97   : > { %3628 = vmatmul.mubr.bf16.gmra.mxu0 %v6549_v35 }
  0x98   : > { %3696 = vmatpush1.bf16.msra.mxu0 %v5443_v18  ;;  %3681 = vmatmul.mubr.bf16.gmra.mxu1 %v6552_v37  ;;  %v5517_v18 = vld [vmem:[%s6442_s28 + $0x524] ss:$16 sps:$4 sm:$0xff]  }
  0x99   : > { %3749 = vmatpush1.bf16.msra.mxu1 %v5446_v19  ;;  %3697 = vmatprep.subr.bf16.mxu0 %v5451_v20  ;;  %v5520_v19 = vld [vmem:[%s6442_s28 + $0x724] ss:$16 sps:$4 sm:$0xff]   ;;  %v5515_v20 = vld [vmem:[%s6442_s28 + $0x520] ss:$16 sps:$4 sm:$0xff]  }
  0x9a   : > { %3750 = vmatprep.subr.bf16.mxu1 %v5454_v21  ;;  %3723 = vmatprep.mubr.bf16.mxu0 %v6574_v49  ;;  %v5518_v21 = vld [vmem:[%s6442_s28 + $0x720] ss:$16 sps:$4 sm:$0xff]  }
  0x9b   : > { %3776 = vmatprep.mubr.bf16.mxu1 %v6580_v51 }
  0x9c   : > { %3698 = vmatpush1.bf16.msra.mxu0 %v5449_v22  ;;  %v5523_v22 = vld [vmem:[%s6442_s28 + $0x504] ss:$16 sps:$4 sm:$0xff]  }
  0x9d   : > { %3751 = vmatpush1.bf16.msra.mxu1 %v5452_v23  ;;  %3699 = vmatprep.subr.bf16.mxu0 %v5457_v24  ;;  %v5526_v23 = vld [vmem:[%s6442_s28 + $0x704] ss:$16 sps:$4 sm:$0xff]   ;;  %v5521_v24 = vld [vmem:[%s6442_s28 + $0x500] ss:$16 sps:$4 sm:$0xff]  }
  0x9e   : > { %3752 = vmatprep.subr.bf16.mxu1 %v5460_v25  ;;  %v5524_v25 = vld [vmem:[%s6442_s28 + $0x700] ss:$16 sps:$4 sm:$0xff]  }
  0xa0   : > { %3700 = vmatpush1.bf16.msra.mxu0 %v5455_v26  ;;  %v5529_v26 = vld [vmem:[%s6442_s28 + $0x8e4] ss:$16 sps:$4 sm:$0xff]  }
  0xa1   : > { %3753 = vmatpush1.bf16.msra.mxu1 %v5458_v27  ;;  %3701 = vmatprep.subr.bf16.mxu0 %v5463_v32  ;;  %v5532_v27 = vld [vmem:[%s6442_s28 + $0xae4] ss:$16 sps:$4 sm:$0xff]   ;;  %v6624_v32 = vcombine.low %v6566_v46, %v6568_v47 }
  0xa2   : > { %3754 = vmatprep.subr.bf16.mxu1 %v5466_v36  ;;  %v6628_v36 = vcombine.low %v6570_v48, %v6576_v50  ;;  %v5541_v46 = vld [vmem:[%s6442_s28 + $0x8a4] ss:$16 sps:$4 sm:$0xff]   ;;  %v5539_v48 = vld [vmem:[%s6442_s28 + $0x8a0] ss:$16 sps:$4 sm:$0xff]  }
  0xa3   : > { %v5544_v47 = vld [vmem:[%s6442_s28 + $0xaa4] ss:$16 sps:$4 sm:$0xff]   ;;  %v5542_v50 = vld [vmem:[%s6442_s28 + $0xaa0] ss:$16 sps:$4 sm:$0xff]  }
  0xa4   : > { %3702 = vmatpush1.bf16.msra.mxu0 %v5461_v38  ;;  %v340_v38 = vld [vmem:[#allocation3 + $0x98] sm:$0xff] }
  0xa5   : > { %3755 = vmatpush1.bf16.msra.mxu1 %v5464_v39  ;;  %3703 = vmatprep.subr.bf16.mxu0 %v5469_v40  ;;  %v348_v39 = vld [vmem:[#allocation3 + $0xd8] sm:$0xff]  ;;  %v5535_v40 = vld [vmem:[%s6442_s28 + $0x8c4] ss:$16 sps:$4 sm:$0xff]  }
  0xa6   : > { %3756 = vmatprep.subr.bf16.mxu1 %v5472_v41  ;;  %v5538_v41 = vld [vmem:[%s6442_s28 + $0xac4] ss:$16 sps:$4 sm:$0xff]  }
  0xa8   : > { %3704 = vmatpush1.bf16.msra.mxu0 %v5467_v42  ;;  %v6632_v42 = vcombine.high %v339_v30, %v347_v31 }
  0xa9   : > { %3757 = vmatpush1.bf16.msra.mxu1 %v5470_v43  ;;  %3705 = vmatprep.subr.bf16.mxu0 %v5475_v44  ;;  %v6634_v43 = vcombine.high %v340_v38, %v348_v39  ;;  %v5533_v44 = vld [vmem:[%s6442_s28 + $0x8c0] ss:$16 sps:$4 sm:$0xff]  }
  0xaa   : > { %3758 = vmatprep.subr.bf16.mxu1 %v5478_v45  ;;  %v5536_v45 = vld [vmem:[%s6442_s28 + $0xac0] ss:$16 sps:$4 sm:$0xff]  }
  0xac   : > { %3706 = vmatpush1.bf16.msra.mxu0 %v5473_v52  ;;  %v6646_v52 = vld [vmem:[#allocation3 + $0x20] sm:$0xff] }
  0xad   : > { %3759 = vmatpush1.bf16.msra.mxu1 %v5476_v54  ;;  %3707 = vmatprep.subr.bf16.mxu0 %v5481_v56  ;;  %v6648_v54 = vld [vmem:[#allocation3 + $0x60] sm:$0xff]  ;;  %v6650_v56 = vcombine.low %v339_v30, %v347_v31 }
  0xae   : > { %3760 = vmatprep.subr.bf16.mxu1 %v5484_v57  ;;  %v6652_v57 = vcombine.low %v340_v38, %v348_v39  ;;  %v5587_v30 = vld [vmem:[%s6442_s28 + $0x9a0] ss:$16 sps:$4 sm:$0xff]   ;;  %v5595_v38 = vld [vmem:[%s6442_s28 + $0x984] ss:$16 sps:$4 sm:$0xff]  }
  0xaf   : > { %v5590_v31 = vld [vmem:[%s6442_s28 + $0xba0] ss:$16 sps:$4 sm:$0xff]   ;;  %v5598_v39 = vld [vmem:[%s6442_s28 + $0xb84] ss:$16 sps:$4 sm:$0xff]  }
  0xb0   : > { %3708 = vmatpush2.bf16.msra.mxu0 %v5479_v58  ;;  %v6654_v58 = vld [vmem:[#allocation3 + $0x28] sm:$0xff] }
  0xb1   : > { %3761 = vmatpush2.bf16.msra.mxu1 %v5482_v59  ;;  %3709 = vmatprep.subr.bf16.mxu0 %v5487_v60  ;;  %v6656_v59 = vld [vmem:[#allocation3 + $0x68] sm:$0xff]  ;;  %v5547_v60 = vld [vmem:[%s6442_s28 + $0x884] ss:$16 sps:$4 sm:$0xff]  }
  0xb2   : > { %3762 = vmatprep.subr.bf16.mxu1 %v5490_v61  ;;  %v5550_v61 = vld [vmem:[%s6442_s28 + $0xa84] ss:$16 sps:$4 sm:$0xff]  }
  0xb4   : > { %3710 = vmatpush2.bf16.msra.mxu0 %v5485_v62  ;;  %v6662_v62 = vcombine.high %v6646_v52, %v6648_v54 }
  0xb5   : > { %3763 = vmatpush2.bf16.msra.mxu1 %v5488_v63  ;;  %3711 = vmatprep.subr.bf16.mxu0 %v5493_v0  ;;  %v6666_v63 = vcombine.high %v6654_v58, %v6656_v59  ;;  %v5545_v0 = vld [vmem:[%s6442_s28 + $0x880] ss:$16 sps:$4 sm:$0xff]  }
  0xb6   : > { %3764 = vmatprep.subr.bf16.mxu1 %v5496_v1  ;;  %v5548_v1 = vld [vmem:[%s6442_s28 + $0xa80] ss:$16 sps:$4 sm:$0xff]  }
  0xb8   : > { %3712 = vmatpush2.bf16.msra.mxu0 %v5491_v2  ;;  %v5553_v2 = vld [vmem:[%s6442_s28 + $0x864] ss:$16 sps:$4 sm:$0xff]  }
  0xb9   : > { %3765 = vmatpush2.bf16.msra.mxu1 %v5494_v3  ;;  %3713 = vmatprep.subr.bf16.mxu0 %v5499_v4  ;;  %v5556_v3 = vld [vmem:[%s6442_s28 + $0xa64] ss:$16 sps:$4 sm:$0xff]   ;;  %v5551_v4 = vld [vmem:[%s6442_s28 + $0x860] ss:$16 sps:$4 sm:$0xff]  }
  0xba   : > { %3766 = vmatprep.subr.bf16.mxu1 %v5502_v5  ;;  %v5554_v5 = vld [vmem:[%s6442_s28 + $0xa60] ss:$16 sps:$4 sm:$0xff]  }
  0xbc   : > { %3714 = vmatpush2.bf16.msra.mxu0 %v5497_v6  ;;  %v5559_v6 = vld [vmem:[%s6442_s28 + $0x844] ss:$16 sps:$4 sm:$0xff]  }
  0xbd   : > { %3767 = vmatpush2.bf16.msra.mxu1 %v5500_v7  ;;  %3715 = vmatprep.subr.bf16.mxu0 %v5505_v10  ;;  %v5562_v7 = vld [vmem:[%s6442_s28 + $0xa44] ss:$16 sps:$4 sm:$0xff]   ;;  %v5557_v10 = vld [vmem:[%s6442_s28 + $0x840] ss:$16 sps:$4 sm:$0xff]  }
  0xbe   : > { %3768 = vmatprep.subr.bf16.mxu1 %v5508_v11  ;;  %v5560_v11 = vld [vmem:[%s6442_s28 + $0xa40] ss:$16 sps:$4 sm:$0xff]  }
  0xc0   : > { %3716 = vmatpush2.bf16.msra.mxu0 %v5503_v12  ;;  %v5565_v12 = vld [vmem:[%s6442_s28 + $0x824] ss:$16 sps:$4 sm:$0xff]  }
  0xc1   : > { %3769 = vmatpush2.bf16.msra.mxu1 %v5506_v13  ;;  %3717 = vmatprep.subr.bf16.mxu0 %v5511_v14  ;;  %v5568_v13 = vld [vmem:[%s6442_s28 + $0xa24] ss:$16 sps:$4 sm:$0xff]   ;;  %v5563_v14 = vld [vmem:[%s6442_s28 + $0x820] ss:$16 sps:$4 sm:$0xff]  }
  0xc2   : > { %3770 = vmatprep.subr.bf16.mxu1 %v5514_v15  ;;  %v5566_v15 = vld [vmem:[%s6442_s28 + $0xa20] ss:$16 sps:$4 sm:$0xff]  }
  0xc4   : > { %3718 = vmatpush2.bf16.msra.mxu0 %v5509_v16  ;;  %v5571_v16 = vld [vmem:[%s6442_s28 + $0x804] ss:$16 sps:$4 sm:$0xff]  }
  0xc5   : > { %3771 = vmatpush2.bf16.msra.mxu1 %v5512_v17  ;;  %3719 = vmatprep.subr.bf16.mxu0 %v5517_v18  ;;  %v5574_v17 = vld [vmem:[%s6442_s28 + $0xa04] ss:$16 sps:$4 sm:$0xff]   ;;  %v5569_v18 = vld [vmem:[%s6442_s28 + $0x800] ss:$16 sps:$4 sm:$0xff]  }
  0xc6   : > { %3772 = vmatprep.subr.bf16.mxu1 %v5520_v19  ;;  %v5572_v19 = vld [vmem:[%s6442_s28 + $0xa00] ss:$16 sps:$4 sm:$0xff]  }
  0xc8   : > { %3720 = vmatpush2.bf16.msra.mxu0 %v5515_v20  ;;  %v5577_v20 = vld [vmem:[%s6442_s28 + $0x9e4] ss:$16 sps:$4 sm:$0xff]  }
  0xc9   : > { %3773 = vmatpush2.bf16.msra.mxu1 %v5518_v21  ;;  %3721 = vmatprep.subr.bf16.mxu0 %v5523_v22  ;;  %v5580_v21 = vld [vmem:[%s6442_s28 + $0xbe4] ss:$16 sps:$4 sm:$0xff]   ;;  %v5575_v22 = vld [vmem:[%s6442_s28 + $0x9e0] ss:$16 sps:$4 sm:$0xff]  }
  0xca   : > { %3774 = vmatprep.subr.bf16.mxu1 %v5526_v23  ;;  %v5578_v23 = vld [vmem:[%s6442_s28 + $0xbe0] ss:$16 sps:$4 sm:$0xff]  }
  0xcc   : > { %3722 = vmatpush2.bf16.msra.mxu0 %v5521_v24  ;;  %v5583_v24 = vld [vmem:[%s6442_s28 + $0x9c4] ss:$16 sps:$4 sm:$0xff]  }
  0xcd   : > { %3775 = vmatpush2.bf16.msra.mxu1 %v5524_v25  ;;  %3797 = vmatprep.subr.bf16.mxu0 %v5529_v26  ;;  %v5586_v25 = vld [vmem:[%s6442_s28 + $0xbc4] ss:$16 sps:$4 sm:$0xff]   ;;  %v5581_v26 = vld [vmem:[%s6442_s28 + $0x9c0] ss:$16 sps:$4 sm:$0xff]  }
  0xce   : > { %3850 = vmatprep.subr.bf16.mxu1 %v5532_v27  ;;  %v5584_v27 = vld [vmem:[%s6442_s28 + $0xbc0] ss:$16 sps:$4 sm:$0xff]  }
  0xcf   : > { %3724 = vmatmul.mubr.bf16.vlgmr.msra.gmra.mxu0 %v6624_v32 }
  0xd0   : > { %3777 = vmatmul.mubr.bf16.vlgmr.msra.gmra.mxu1 %v6628_v36  ;;  %3798 = vmatpush1.bf16.msra.mxu0 %v5527_v28  ;;  %v5589_v28 = vld [vmem:[%s6442_s28 + $0x9a4] ss:$16 sps:$4 sm:$0xff]  }
  0xd1   : > { %3851 = vmatpush1.bf16.msra.mxu1 %v5530_v29  ;;  %3799 = vmatprep.subr.bf16.mxu0 %v5535_v40  ;;  %v5592_v29 = vld [vmem:[%s6442_s28 + $0xba4] ss:$16 sps:$4 sm:$0xff]   ;;  %v5593_v40 = vld [vmem:[%s6442_s28 + $0x980] ss:$16 sps:$4 sm:$0xff]  }
  0xd2   : > { %3852 = vmatprep.subr.bf16.mxu1 %v5538_v41  ;;  %3733 = vmatprep.mubr.bf16.mxu0 %v6632_v42  ;;  %v5596_v41 = vld [vmem:[%s6442_s28 + $0xb80] ss:$16 sps:$4 sm:$0xff]  }
  0xd3   : > { %3786 = vmatprep.mubr.bf16.mxu1 %v6634_v43 }
  0xd4   : > { %3800 = vmatpush1.bf16.msra.mxu0 %v5533_v44  ;;  %v5601_v44 = vld [vmem:[%s6442_s28 + $0x964] ss:$16 sps:$4 sm:$0xff]  }
  0xd5   : > { %3853 = vmatpush1.bf16.msra.mxu1 %v5536_v45  ;;  %3801 = vmatprep.subr.bf16.mxu0 %v5541_v46  ;;  %v5604_v45 = vld [vmem:[%s6442_s28 + $0xb64] ss:$16 sps:$4 sm:$0xff]   ;;  %v5599_v46 = vld [vmem:[%s6442_s28 + $0x960] ss:$16 sps:$4 sm:$0xff]  }
  0xd6   : > { %3854 = vmatprep.subr.bf16.mxu1 %v5544_v47  ;;  %v5602_v47 = vld [vmem:[%s6442_s28 + $0xb60] ss:$16 sps:$4 sm:$0xff]  }
  0xd7   : > { %3734 = vmatmul.mubr.bf16.gmra.mxu0 %v6650_v56 }
  0xd8   : > { %3787 = vmatmul.mubr.bf16.gmra.mxu1 %v6652_v57  ;;  %3802 = vmatpush1.bf16.msra.mxu0 %v5539_v48  ;;  %v5607_v48 = vld [vmem:[%s6442_s28 + $0x944] ss:$16 sps:$4 sm:$0xff]  }
  0xd9   : > { %3855 = vmatpush1.bf16.msra.mxu1 %v5542_v50  ;;  %3803 = vmatprep.subr.bf16.mxu0 %v5547_v60  ;;  %v5610_v50 = vld [vmem:[%s6442_s28 + $0xb44] ss:$16 sps:$4 sm:$0xff]   ;;  %v5605_v60 = vld [vmem:[%s6442_s28 + $0x940] ss:$16 sps:$4 sm:$0xff]  }
  0xda   : > { %3856 = vmatprep.subr.bf16.mxu1 %v5550_v61  ;;  %3829 = vmatprep.mubr.bf16.mxu0 %v6662_v62  ;;  %v5608_v61 = vld [vmem:[%s6442_s28 + $0xb40] ss:$16 sps:$4 sm:$0xff]  }
  0xdb   : > { %3882 = vmatprep.mubr.bf16.mxu1 %v6666_v63 }
  0xdc   : > { %3804 = vmatpush1.bf16.msra.mxu0 %v5545_v0  ;;  %v5613_v0 = vld [vmem:[%s6442_s28 + $0x924] ss:$16 sps:$4 sm:$0xff]  }
  0xdd   : > { %3857 = vmatpush1.bf16.msra.mxu1 %v5548_v1  ;;  %3805 = vmatprep.subr.bf16.mxu0 %v5553_v2  ;;  %v5616_v1 = vld [vmem:[%s6442_s28 + $0xb24] ss:$16 sps:$4 sm:$0xff]   ;;  %v5611_v2 = vld [vmem:[%s6442_s28 + $0x920] ss:$16 sps:$4 sm:$0xff]  }
  0xde   : > { %3858 = vmatprep.subr.bf16.mxu1 %v5556_v3  ;;  %v5614_v3 = vld [vmem:[%s6442_s28 + $0xb20] ss:$16 sps:$4 sm:$0xff]  }
  0xe0   : > { %3806 = vmatpush1.bf16.msra.mxu0 %v5551_v4  ;;  %v5619_v4 = vld [vmem:[%s6442_s28 + $0x904] ss:$16 sps:$4 sm:$0xff]  }
  0xe1   : > { %3859 = vmatpush1.bf16.msra.mxu1 %v5554_v5  ;;  %3807 = vmatprep.subr.bf16.mxu0 %v5559_v6  ;;  %v5622_v5 = vld [vmem:[%s6442_s28 + $0xb04] ss:$16 sps:$4 sm:$0xff]   ;;  %v5617_v6 = vld [vmem:[%s6442_s28 + $0x900] ss:$16 sps:$4 sm:$0xff]  }
  0xe2   : > { %3860 = vmatprep.subr.bf16.mxu1 %v5562_v7  ;;  %v5620_v7 = vld [vmem:[%s6442_s28 + $0xb00] ss:$16 sps:$4 sm:$0xff]  }
  0xe4   : > { %3808 = vmatpush1.bf16.msra.mxu0 %v5557_v10  ;;  %v5625_v10 = vld [vmem:[%s6442_s28 + $0xce4] ss:$16 sps:$4 sm:$0xff]  }
  0xe5   : > { %3861 = vmatpush1.bf16.msra.mxu1 %v5560_v11  ;;  %3809 = vmatprep.subr.bf16.mxu0 %v5565_v12  ;;  %v5628_v11 = vld [vmem:[%s6442_s28 + $0xee4] ss:$16 sps:$4 sm:$0xff]   ;;  %v5623_v12 = vld [vmem:[%s6442_s28 + $0xce0] ss:$16 sps:$4 sm:$0xff]  }
  0xe6   : > { %3862 = vmatprep.subr.bf16.mxu1 %v5568_v13  ;;  %v5626_v13 = vld [vmem:[%s6442_s28 + $0xee0] ss:$16 sps:$4 sm:$0xff]  }
  0xe8   : > { %3810 = vmatpush1.bf16.msra.mxu0 %v5563_v14  ;;  %v341_v14 = vld [vmem:[#allocation3 + $0xa0] sm:$0xff] }
  0xe9   : > { %3863 = vmatpush1.bf16.msra.mxu1 %v5566_v15  ;;  %3811 = vmatprep.subr.bf16.mxu0 %v5571_v16  ;;  %v349_v15 = vld [vmem:[#allocation3 + $0xe0] sm:$0xff]  ;;  %v6728_v16 = vcombine.low %v6646_v52, %v6648_v54 }
  0xea   : > { %3864 = vmatprep.subr.bf16.mxu1 %v5574_v17  ;;  %v6732_v17 = vcombine.low %v6654_v58, %v6656_v59  ;;  %v5629_v54 = vld [vmem:[%s6442_s28 + $0xcc0] ss:$16 sps:$4 sm:$0xff]   ;;  %v5637_v59 = vld [vmem:[%s6442_s28 + $0xca4] ss:$16 sps:$4 sm:$0xff]  }
  0xeb   : > { %v5632_v58 = vld [vmem:[%s6442_s28 + $0xec0] ss:$16 sps:$4 sm:$0xff]  }
  0xec   : > { %3812 = vmatpush1.bf16.msra.mxu0 %v5569_v18  ;;  %v342_v18 = vld [vmem:[#allocation3 + $0xa8] sm:$0xff] }
  0xed   : > { %3865 = vmatpush1.bf16.msra.mxu1 %v5572_v19  ;;  %3813 = vmatprep.subr.bf16.mxu0 %v5577_v20  ;;  %v350_v19 = vld [vmem:[#allocation3 + $0xe8] sm:$0xff]  ;;  %v5631_v20 = vld [vmem:[%s6442_s28 + $0xcc4] ss:$16 sps:$4 sm:$0xff]  }
  0xee   : > { %3866 = vmatprep.subr.bf16.mxu1 %v5580_v21  ;;  %v5634_v21 = vld [vmem:[%s6442_s28 + $0xec4] ss:$16 sps:$4 sm:$0xff]   ;;  %v6738_v52 = vcombine.high %v342_v18, %v350_v19 }
  0xf0   : > { %3814 = vmatpush2.bf16.msra.mxu0 %v5575_v22  ;;  %v6736_v22 = vcombine.high %v341_v14, %v349_v15 }
  0xf1   : > { %3867 = vmatpush2.bf16.msra.mxu1 %v5578_v23  ;;  %3815 = vmatprep.subr.bf16.mxu0 %v5583_v24  ;;  %v5640_v23 = vld [vmem:[%s6442_s28 + $0xea4] ss:$16 sps:$4 sm:$0xff]   ;;  %v5635_v24 = vld [vmem:[%s6442_s28 + $0xca0] ss:$16 sps:$4 sm:$0xff]  }
  0xf2   : > { %3868 = vmatprep.subr.bf16.mxu1 %v5586_v25  ;;  %v5638_v25 = vld [vmem:[%s6442_s28 + $0xea0] ss:$16 sps:$4 sm:$0xff]  }
  0xf4   : > { %3816 = vmatpush2.bf16.msra.mxu0 %v5581_v26  ;;  %v6750_v26 = vld [vmem:[#allocation3 + $0x30] sm:$0xff] }
  0xf5   : > { %3869 = vmatpush2.bf16.msra.mxu1 %v5584_v27  ;;  %3817 = vmatprep.subr.bf16.mxu0 %v5589_v28  ;;  %v6752_v27 = vld [vmem:[#allocation3 + $0x70] sm:$0xff]  ;;  %v6754_v28 = vcombine.low %v341_v14, %v349_v15 }
  0xf6   : > { %3870 = vmatprep.subr.bf16.mxu1 %v5592_v29  ;;  %v6756_v29 = vcombine.low %v342_v18, %v350_v19  ;;  %v5671_v14 = vld [vmem:[%s6442_s28 + $0xde0] ss:$16 sps:$4 sm:$0xff]   ;;  %v5679_v18 = vld [vmem:[%s6442_s28 + $0xdc4] ss:$16 sps:$4 sm:$0xff]  }
  0xf7   : > { %v5674_v15 = vld [vmem:[%s6442_s28 + $0xfe0] ss:$16 sps:$4 sm:$0xff]   ;;  %v5682_v19 = vld [vmem:[%s6442_s28 + $0xfc4] ss:$16 sps:$4 sm:$0xff]  }
  0xf8   : > { %3818 = vmatpush2.bf16.msra.mxu0 %v5587_v30  ;;  %v6758_v30 = vld [vmem:[#allocation3 + $0x38] sm:$0xff] }
  0xf9   : > { %3871 = vmatpush2.bf16.msra.mxu1 %v5590_v31  ;;  %3819 = vmatprep.subr.bf16.mxu0 %v5595_v38  ;;  %v6760_v31 = vld [vmem:[#allocation3 + $0x78] sm:$0xff]  ;;  %v5643_v38 = vld [vmem:[%s6442_s28 + $0xc84] ss:$16 sps:$4 sm:$0xff]  }
  0xfa   : > { %3872 = vmatprep.subr.bf16.mxu1 %v5598_v39  ;;  %v5646_v39 = vld [vmem:[%s6442_s28 + $0xe84] ss:$16 sps:$4 sm:$0xff]  }
  0xfc   : > { %3820 = vmatpush2.bf16.msra.mxu0 %v5593_v40  ;;  %v6766_v40 = vcombine.high %v6750_v26, %v6752_v27 }
  0xfd   : > { %3873 = vmatpush2.bf16.msra.mxu1 %v5596_v41  ;;  %3821 = vmatprep.subr.bf16.mxu0 %v5601_v44  ;;  %v6770_v41 = vcombine.high %v6758_v30, %v6760_v31  ;;  %v5641_v44 = vld [vmem:[%s6442_s28 + $0xc80] ss:$16 sps:$4 sm:$0xff]  }
  0xfe   : > { %3874 = vmatprep.subr.bf16.mxu1 %v5604_v45  ;;  %v5644_v45 = vld [vmem:[%s6442_s28 + $0xe80] ss:$16 sps:$4 sm:$0xff]  }
 0x100   : > { %3822 = vmatpush2.bf16.msra.mxu0 %v5599_v46  ;;  %v5649_v46 = vld [vmem:[%s6442_s28 + $0xc64] ss:$16 sps:$4 sm:$0xff]  }
 0x101   : > { %3875 = vmatpush2.bf16.msra.mxu1 %v5602_v47  ;;  %3823 = vmatprep.subr.bf16.mxu0 %v5607_v48  ;;  %v5652_v47 = vld [vmem:[%s6442_s28 + $0xe64] ss:$16 sps:$4 sm:$0xff]   ;;  %v5647_v48 = vld [vmem:[%s6442_s28 + $0xc60] ss:$16 sps:$4 sm:$0xff]  }
 0x102   : > { %3876 = vmatprep.subr.bf16.mxu1 %v5610_v50  ;;  %v5650_v50 = vld [vmem:[%s6442_s28 + $0xe60] ss:$16 sps:$4 sm:$0xff]  }
 0x104   : > { %3824 = vmatpush2.bf16.msra.mxu0 %v5605_v60  ;;  %v5655_v60 = vld [vmem:[%s6442_s28 + $0xc44] ss:$16 sps:$4 sm:$0xff]  }
 0x105   : > { %3877 = vmatpush2.bf16.msra.mxu1 %v5608_v61  ;;  %3825 = vmatprep.subr.bf16.mxu0 %v5613_v0  ;;  %v5658_v61 = vld [vmem:[%s6442_s28 + $0xe44] ss:$16 sps:$4 sm:$0xff]   ;;  %v5653_v0 = vld [vmem:[%s6442_s28 + $0xc40] ss:$16 sps:$4 sm:$0xff]  }
 0x106   : > { %3878 = vmatprep.subr.bf16.mxu1 %v5616_v1  ;;  %v5656_v1 = vld [vmem:[%s6442_s28 + $0xe40] ss:$16 sps:$4 sm:$0xff]  }
 0x108   : > { %3826 = vmatpush2.bf16.msra.mxu0 %v5611_v2  ;;  %v5661_v2 = vld [vmem:[%s6442_s28 + $0xc24] ss:$16 sps:$4 sm:$0xff]  }
 0x109   : > { %3879 = vmatpush2.bf16.msra.mxu1 %v5614_v3  ;;  %3827 = vmatprep.subr.bf16.mxu0 %v5619_v4  ;;  %v5664_v3 = vld [vmem:[%s6442_s28 + $0xe24] ss:$16 sps:$4 sm:$0xff]   ;;  %v5659_v4 = vld [vmem:[%s6442_s28 + $0xc20] ss:$16 sps:$4 sm:$0xff]  }
 0x10a   : > { %3880 = vmatprep.subr.bf16.mxu1 %v5622_v5  ;;  %v5662_v5 = vld [vmem:[%s6442_s28 + $0xe20] ss:$16 sps:$4 sm:$0xff]  }
 0x10c   : > { %3828 = vmatpush2.bf16.msra.mxu0 %v5617_v6  ;;  %v5667_v6 = vld [vmem:[%s6442_s28 + $0xc04] ss:$16 sps:$4 sm:$0xff]  }
 0x10d   : > { %3881 = vmatpush2.bf16.msra.mxu1 %v5620_v7  ;;  %3903 = vmatprep.subr.bf16.mxu0 %v5625_v10  ;;  %v5670_v7 = vld [vmem:[%s6442_s28 + $0xe04] ss:$16 sps:$4 sm:$0xff]   ;;  %v5665_v10 = vld [vmem:[%s6442_s28 + $0xc00] ss:$16 sps:$4 sm:$0xff]  }
 0x10e   : > { %3956 = vmatprep.subr.bf16.mxu1 %v5628_v11  ;;  %v5668_v11 = vld [vmem:[%s6442_s28 + $0xe00] ss:$16 sps:$4 sm:$0xff]  }
 0x10f   : > { %3830 = vmatmul.mubr.bf16.vlgmr.msra.gmra.mxu0 %v6728_v16 }
 0x110   : > { %3883 = vmatmul.mubr.bf16.vlgmr.msra.gmra.mxu1 %v6732_v17  ;;  %3904 = vmatpush1.bf16.msra.mxu0 %v5623_v12  ;;  %v5673_v12 = vld [vmem:[%s6442_s28 + $0xde4] ss:$16 sps:$4 sm:$0xff]  }
 0x111   : > { %3957 = vmatpush1.bf16.msra.mxu1 %v5626_v13  ;;  %3905 = vmatprep.subr.bf16.mxu0 %v5631_v20  ;;  %v5676_v13 = vld [vmem:[%s6442_s28 + $0xfe4] ss:$16 sps:$4 sm:$0xff]   ;;  %v5677_v20 = vld [vmem:[%s6442_s28 + $0xdc0] ss:$16 sps:$4 sm:$0xff]  }
 0x112   : > { %3958 = vmatprep.subr.bf16.mxu1 %v5634_v21  ;;  %3839 = vmatprep.mubr.bf16.mxu0 %v6736_v22  ;;  %v5680_v21 = vld [vmem:[%s6442_s28 + $0xfc0] ss:$16 sps:$4 sm:$0xff]  }
 0x113   : > { %3892 = vmatprep.mubr.bf16.mxu1 %v6738_v52 }
 0x114   : > { %3906 = vmatpush1.bf16.msra.mxu0 %v5629_v54  ;;  %v5685_v54 = vld [vmem:[%s6442_s28 + $0xda4] ss:$16 sps:$4 sm:$0xff]  }
 0x115   : > { %3959 = vmatpush1.bf16.msra.mxu1 %v5632_v58  ;;  %3907 = vmatprep.subr.bf16.mxu0 %v5637_v59  ;;  %v5688_v58 = vld [vmem:[%s6442_s28 + $0xfa4] ss:$16 sps:$4 sm:$0xff]   ;;  %v5683_v59 = vld [vmem:[%s6442_s28 + $0xda0] ss:$16 sps:$4 sm:$0xff]  }
 0x116   : > { %3960 = vmatprep.subr.bf16.mxu1 %v5640_v23  ;;  %v5686_v23 = vld [vmem:[%s6442_s28 + $0xfa0] ss:$16 sps:$4 sm:$0xff]  }
 0x117   : > { %3840 = vmatmul.mubr.bf16.gmra.mxu0 %v6754_v28 }
 0x118   : > { %3893 = vmatmul.mubr.bf16.gmra.mxu1 %v6756_v29  ;;  %3908 = vmatpush1.bf16.msra.mxu0 %v5635_v24  ;;  %v5691_v24 = vld [vmem:[%s6442_s28 + $0xd84] ss:$16 sps:$4 sm:$0xff]  }
 0x119   : > { %3961 = vmatpush1.bf16.msra.mxu1 %v5638_v25  ;;  %3909 = vmatprep.subr.bf16.mxu0 %v5643_v38  ;;  %v5694_v25 = vld [vmem:[%s6442_s28 + $0xf84] ss:$16 sps:$4 sm:$0xff]   ;;  %v5689_v38 = vld [vmem:[%s6442_s28 + $0xd80] ss:$16 sps:$4 sm:$0xff]  }
 0x11a   : > { %3962 = vmatprep.subr.bf16.mxu1 %v5646_v39  ;;  %3935 = vmatprep.mubr.bf16.mxu0 %v6766_v40  ;;  %v5692_v39 = vld [vmem:[%s6442_s28 + $0xf80] ss:$16 sps:$4 sm:$0xff]  }
 0x11b   : > { %3988 = vmatprep.mubr.bf16.mxu1 %v6770_v41 }
 0x11c   : > { %3910 = vmatpush1.bf16.msra.mxu0 %v5641_v44  ;;  %v5697_v44 = vld [vmem:[%s6442_s28 + $0xd64] ss:$16 sps:$4 sm:$0xff]  }
 0x11d   : > { %3963 = vmatpush1.bf16.msra.mxu1 %v5644_v45  ;;  %3911 = vmatprep.subr.bf16.mxu0 %v5649_v46  ;;  %v5700_v45 = vld [vmem:[%s6442_s28 + $0xf64] ss:$16 sps:$4 sm:$0xff]   ;;  %v5695_v46 = vld [vmem:[%s6442_s28 + $0xd60] ss:$16 sps:$4 sm:$0xff]  }
 0x11e   : > { %3964 = vmatprep.subr.bf16.mxu1 %v5652_v47  ;;  %v5698_v47 = vld [vmem:[%s6442_s28 + $0xf60] ss:$16 sps:$4 sm:$0xff]  }
 0x120   : > { %3912 = vmatpush1.bf16.msra.mxu0 %v5647_v48  ;;  %v5703_v48 = vld [vmem:[%s6442_s28 + $0xd44] ss:$16 sps:$4 sm:$0xff]  }
 0x121   : > { %3965 = vmatpush1.bf16.msra.mxu1 %v5650_v50  ;;  %3913 = vmatprep.subr.bf16.mxu0 %v5655_v60  ;;  %v5706_v50 = vld [vmem:[%s6442_s28 + $0xf44] ss:$16 sps:$4 sm:$0xff]   ;;  %v5701_v60 = vld [vmem:[%s6442_s28 + $0xd40] ss:$16 sps:$4 sm:$0xff]  }
 0x122   : > { %3966 = vmatprep.subr.bf16.mxu1 %v5658_v61  ;;  %v5704_v61 = vld [vmem:[%s6442_s28 + $0xf40] ss:$16 sps:$4 sm:$0xff]  }
 0x124   : > { %3914 = vmatpush1.bf16.msra.mxu0 %v5653_v0  ;;  %v5709_v0 = vld [vmem:[%s6442_s28 + $0xd24] ss:$16 sps:$4 sm:$0xff]  }
 0x125   : > { %3967 = vmatpush1.bf16.msra.mxu1 %v5656_v1  ;;  %3915 = vmatprep.subr.bf16.mxu0 %v5661_v2  ;;  %v5712_v1 = vld [vmem:[%s6442_s28 + $0xf24] ss:$16 sps:$4 sm:$0xff]   ;;  %v5707_v2 = vld [vmem:[%s6442_s28 + $0xd20] ss:$16 sps:$4 sm:$0xff]  }
 0x126   : > { %3968 = vmatprep.subr.bf16.mxu1 %v5664_v3  ;;  %v5710_v3 = vld [vmem:[%s6442_s28 + $0xf20] ss:$16 sps:$4 sm:$0xff]  }
 0x128   : > { %3916 = vmatpush1.bf16.msra.mxu0 %v5659_v4  ;;  %v5715_v4 = vld [vmem:[%s6442_s28 + $0xd04] ss:$16 sps:$4 sm:$0xff]  }
 0x129   : > { %3969 = vmatpush1.bf16.msra.mxu1 %v5662_v5  ;;  %3917 = vmatprep.subr.bf16.mxu0 %v5667_v6  ;;  %v5718_v5 = vld [vmem:[%s6442_s28 + $0xf04] ss:$16 sps:$4 sm:$0xff]   ;;  %v5713_v6 = vld [vmem:[%s6442_s28 + $0xd00] ss:$16 sps:$4 sm:$0xff]  }
 0x12a   : > { %3970 = vmatprep.subr.bf16.mxu1 %v5670_v7  ;;  %v5716_v7 = vld [vmem:[%s6442_s28 + $0xf00] ss:$16 sps:$4 sm:$0xff]  }
 0x12c   : > { %3918 = vmatpush1.bf16.msra.mxu0 %v5665_v10  ;;  %v5721_v10 = vld [vmem:[%s6442_s28 + $0xec] ss:$16 sps:$4 sm:$0xff]  }
 0x12d   : > { %3971 = vmatpush1.bf16.msra.mxu1 %v5668_v11  ;;  %3919 = vmatprep.subr.bf16.mxu0 %v5673_v12  ;;  %v5724_v11 = vld [vmem:[%s6442_s28 + $0x2ec] ss:$16 sps:$4 sm:$0xff]   ;;  %v5719_v12 = vld [vmem:[%s6442_s28 + $0xe8] ss:$16 sps:$4 sm:$0xff]  }
 0x12e   : > { %3972 = vmatprep.subr.bf16.mxu1 %v5676_v13  ;;  %v5722_v13 = vld [vmem:[%s6442_s28 + $0x2e8] ss:$16 sps:$4 sm:$0xff]  }
 0x130   : > { %3920 = vmatpush2.bf16.msra.mxu0 %v5671_v14  ;;  %v343_v14 = vld [vmem:[#allocation3 + $0xb0] sm:$0xff] }
 0x131   : > { %3973 = vmatpush2.bf16.msra.mxu1 %v5674_v15  ;;  %3921 = vmatprep.subr.bf16.mxu0 %v5679_v18  ;;  %v351_v15 = vld [vmem:[#allocation3 + $0xf0] sm:$0xff]  ;;  %v6832_v18 = vcombine.low %v6750_v26, %v6752_v27  ;;  %v5725_v27 = vld [vmem:[%s6442_s28 + $0xc8] ss:$16 sps:$4 sm:$0xff]  }
 0x132   : > { %3974 = vmatprep.subr.bf16.mxu1 %v5682_v19  ;;  %v6836_v19 = vcombine.low %v6758_v30, %v6760_v31  ;;  %v5728_v30 = vld [vmem:[%s6442_s28 + $0x2c8] ss:$16 sps:$4 sm:$0xff]   ;;  %v5733_v31 = vld [vmem:[%s6442_s28 + $0xac] ss:$16 sps:$4 sm:$0xff]  }
 0x134   : > { %3922 = vmatpush2.bf16.msra.mxu0 %v5677_v20  ;;  %7401 = vst [vmem:[#allocation13_spill] sm:$0xff] %v6836_v19  ;;  %v344_v20 = vld [vmem:[#allocation3 + $0xb8] sm:$0xff] }
 0x135   : > { %3975 = vmatpush2.bf16.msra.mxu1 %v5680_v21  ;;  %3923 = vmatprep.subr.bf16.mxu0 %v5685_v54  ;;  %v352_v21 = vld [vmem:[#allocation3 + $0xf8] sm:$0xff] }
 0x136   : > { %3976 = vmatprep.subr.bf16.mxu1 %v5688_v58  ;;  %v5727_v54 = vld [vmem:[%s6442_s28 + $0xcc] ss:$16 sps:$4 sm:$0xff]   ;;  %v6842_v26 = vcombine.high %v344_v20, %v352_v21 }
 0x137   : > { %v5730_v58 = vld [vmem:[%s6442_s28 + $0x2cc] ss:$16 sps:$4 sm:$0xff]  }
 0x138   : > { %3924 = vmatpush2.bf16.msra.mxu0 %v5683_v59  ;;  %v6840_v59 = vcombine.high %v343_v14, %v351_v15  ;;  %7403 = vst [vmem:[#allocation15_spill] sm:$0xff] %v6842_v26 }
 0x139   : > { %3977 = vmatpush2.bf16.msra.mxu1 %v5686_v23  ;;  %3925 = vmatprep.subr.bf16.mxu0 %v5691_v24  ;;  %v5736_v23 = vld [vmem:[%s6442_s28 + $0x2ac] ss:$16 sps:$4 sm:$0xff]   ;;  %v6852_v24 = vcombine.low %v343_v14, %v351_v15  ;;  %v5767_v14 = vld [vmem:[%s6442_s28 + $0x1e8] ss:$16 sps:$4 sm:$0xff]  }
 0x13a   : > { %3978 = vmatprep.subr.bf16.mxu1 %v5694_v25  ;;  %7402 = vst [vmem:[#allocation14_spill] sm:$0xff] %v6840_v59  ;;  %v5731_v25 = vld [vmem:[%s6442_s28 + $0xa8] ss:$16 sps:$4 sm:$0xff]  }
 0x13b   : > { %7404 = vst [vmem:[#allocation16_spill] sm:$0xff] %v6852_v24  ;;  %v5770_v15 = vld [vmem:[%s6442_s28 + $0x3e8] ss:$16 sps:$4 sm:$0xff]  }
 0x13c   : > { %3926 = vmatpush2.bf16.msra.mxu0 %v5689_v38  ;;  %v5734_v38 = vld [vmem:[%s6442_s28 + $0x2a8] ss:$16 sps:$4 sm:$0xff]  }
 0x13d   : > { %3979 = vmatpush2.bf16.msra.mxu1 %v5692_v39  ;;  %3927 = vmatprep.subr.bf16.mxu0 %v5697_v44  ;;  %v6856_v39 = vcombine.low %v344_v20, %v352_v21  ;;  %v5739_v44 = vld [vmem:[%s6442_s28 + $0x8c] ss:$16 sps:$4 sm:$0xff]  }
 0x13e   : > { %3980 = vmatprep.subr.bf16.mxu1 %v5700_v45  ;;  %v5742_v45 = vld [vmem:[%s6442_s28 + $0x28c] ss:$16 sps:$4 sm:$0xff]  }
 0x13f   : > { %7405 = vst [vmem:[#allocation17_spill] sm:$0xff] %v6856_v39  ;;  %v5775_v20 = vld [vmem:[%s6442_s28 + $0x1cc] ss:$16 sps:$4 sm:$0xff]  }
 0x140   : > { %3928 = vmatpush2.bf16.msra.mxu0 %v5695_v46  ;;  %v5737_v46 = vld [vmem:[%s6442_s28 + $0x88] ss:$16 sps:$4 sm:$0xff]   ;;  %v5778_v21 = vld [vmem:[%s6442_s28 + $0x3cc] ss:$16 sps:$4 sm:$0xff]  }
 0x141   : > { %3981 = vmatpush2.bf16.msra.mxu1 %v5698_v47  ;;  %3929 = vmatprep.subr.bf16.mxu0 %v5703_v48  ;;  %v5740_v47 = vld [vmem:[%s6442_s28 + $0x288] ss:$16 sps:$4 sm:$0xff]   ;;  %v5745_v48 = vld [vmem:[%s6442_s28 + $0x6c] ss:$16 sps:$4 sm:$0xff]  }
 0x142   : > { %3982 = vmatprep.subr.bf16.mxu1 %v5706_v50  ;;  %v5748_v50 = vld [vmem:[%s6442_s28 + $0x26c] ss:$16 sps:$4 sm:$0xff]  }
 0x144   : > { %3930 = vmatpush2.bf16.msra.mxu0 %v5701_v60  ;;  %v5743_v60 = vld [vmem:[%s6442_s28 + $0x68] ss:$16 sps:$4 sm:$0xff]  }
 0x145   : > { %3983 = vmatpush2.bf16.msra.mxu1 %v5704_v61  ;;  %3931 = vmatprep.subr.bf16.mxu0 %v5709_v0  ;;  %v5746_v61 = vld [vmem:[%s6442_s28 + $0x268] ss:$16 sps:$4 sm:$0xff]   ;;  %v5751_v0 = vld [vmem:[%s6442_s28 + $0x4c] ss:$16 sps:$4 sm:$0xff]  }
 0x146   : > { %3984 = vmatprep.subr.bf16.mxu1 %v5712_v1  ;;  %v5754_v1 = vld [vmem:[%s6442_s28 + $0x24c] ss:$16 sps:$4 sm:$0xff]  }
 0x148   : > { %3932 = vmatpush2.bf16.msra.mxu0 %v5707_v2  ;;  %v5749_v2 = vld [vmem:[%s6442_s28 + $0x48] ss:$16 sps:$4 sm:$0xff]  }
 0x149   : > { %3985 = vmatpush2.bf16.msra.mxu1 %v5710_v3  ;;  %3933 = vmatprep.subr.bf16.mxu0 %v5715_v4  ;;  %v5752_v3 = vld [vmem:[%s6442_s28 + $0x248] ss:$16 sps:$4 sm:$0xff]  }
 0x14a   : > { %3986 = vmatprep.subr.bf16.mxu1 %v5718_v5  ;;  %v5755_v4 = vld [vmem:[%s6442_s28 + $0x28] ss:$16 sps:$4 sm:$0xff]  }
 0x14b   : > { %v5758_v5 = vld [vmem:[%s6442_s28 + $0x228] ss:$16 sps:$4 sm:$0xff]  }
 0x14c   : > { %3934 = vmatpush2.bf16.msra.mxu0 %v5713_v6  ;;  %v5763_v6 = vld [vmem:[%s6442_s28 + $0xc] ss:$16 sps:$4 sm:$0xff]  }
 0x14d   : > { %3987 = vmatpush2.bf16.msra.mxu1 %v5716_v7  ;;  %4009 = vmatprep.subr.bf16.mxu0 %v5721_v10  ;;  %v5766_v7 = vld [vmem:[%s6442_s28 + $0x20c] ss:$16 sps:$4 sm:$0xff]   ;;  %v5761_v10 = vld [vmem:[%s6442_s28 + $0x8] ss:$16 sps:$4 sm:$0xff]  }
 0x14e   : > { %4062 = vmatprep.subr.bf16.mxu1 %v5724_v11  ;;  %v5764_v11 = vld [vmem:[%s6442_s28 + $0x208] ss:$16 sps:$4 sm:$0xff]  }
 0x14f   : > { %3936 = vmatmul.mubr.bf16.vlgmr.msra.gmra.mxu0 %v6832_v18 }
 0x150   : > { %3989 = vmatmul.mubr.bf16.vlgmr.msra.gmra.mxu1 %v6836_v19  ;;  %4010 = vmatpush1.bf16.msra.mxu0 %v5719_v12  ;;  %v5769_v12 = vld [vmem:[%s6442_s28 + $0x1ec] ss:$16 sps:$4 sm:$0xff]  }
 0x151   : > { %4063 = vmatpush1.bf16.msra.mxu1 %v5722_v13  ;;  %4011 = vmatprep.subr.bf16.mxu0 %v5727_v54  ;;  %v5772_v13 = vld [vmem:[%s6442_s28 + $0x3ec] ss:$16 sps:$4 sm:$0xff]   ;;  %v5773_v54 = vld [vmem:[%s6442_s28 + $0x1c8] ss:$16 sps:$4 sm:$0xff]  }
 0x152   : > { %4064 = vmatprep.subr.bf16.mxu1 %v5730_v58  ;;  %3945 = vmatprep.mubr.bf16.mxu0 %v6840_v59  ;;  %v5776_v58 = vld [vmem:[%s6442_s28 + $0x3c8] ss:$16 sps:$4 sm:$0xff]  }
 0x153   : > { %3998 = vmatprep.mubr.bf16.mxu1 %v6842_v26  ;;  %v5995_v26 = vld [vmem:[%s6442_s28 + $0x928] ss:$16 sps:$4 sm:$0xff]  }
 0x154   : > { %4012 = vmatpush1.bf16.msra.mxu0 %v5725_v27  ;;  %v5781_v27 = vld [vmem:[%s6442_s28 + $0x1ac] ss:$16 sps:$4 sm:$0xff]   ;;  %v5998_v59 = vld [vmem:[%s6442_s28 + $0xb28] ss:$16 sps:$4 sm:$0xff]  }
 0x155   : > { %4065 = vmatpush1.bf16.msra.mxu1 %v5728_v30  ;;  %4013 = vmatprep.subr.bf16.mxu0 %v5733_v31  ;;  %v5784_v30 = vld [vmem:[%s6442_s28 + $0x3ac] ss:$16 sps:$4 sm:$0xff]   ;;  %v5779_v31 = vld [vmem:[%s6442_s28 + $0x1a8] ss:$16 sps:$4 sm:$0xff]  }
 0x156   : > { %4066 = vmatprep.subr.bf16.mxu1 %v5736_v23  ;;  %v5782_v23 = vld [vmem:[%s6442_s28 + $0x3a8] ss:$16 sps:$4 sm:$0xff]  }
 0x157   : > { %3946 = vmatmul.mubr.bf16.gmra.mxu0 %v6852_v24 }
 0x158   : > { %3999 = vmatmul.mubr.bf16.gmra.mxu1 %v6856_v39  ;;  %4014 = vmatpush1.bf16.msra.mxu0 %v5731_v25  ;;  %v5787_v25 = vld [vmem:[%s6442_s28 + $0x18c] ss:$16 sps:$4 sm:$0xff]  }
 0x159   : > { %4067 = vmatpush1.bf16.msra.mxu1 %v5734_v38  ;;  %4015 = vmatprep.subr.bf16.mxu0 %v5739_v44  ;;  %v5790_v38 = vld [vmem:[%s6442_s28 + $0x38c] ss:$16 sps:$4 sm:$0xff]   ;;  %v5785_v44 = vld [vmem:[%s6442_s28 + $0x188] ss:$16 sps:$4 sm:$0xff]  }
 0x15a   : > { %4068 = vmatprep.subr.bf16.mxu1 %v5742_v45  ;;  %4041 = vmatprep.mubr.bf16.mxu0 %v6497_v53  ;;  %v5757_v53 = vld [vmem:[%s6442_s28 + $0x2c] ss:$16 sps:$4 sm:$0xff]   ;;  %v5788_v45 = vld [vmem:[%s6442_s28 + $0x388] ss:$16 sps:$4 sm:$0xff]  }
 0x15b   : > { %4094 = vmatprep.mubr.bf16.mxu1 %v6500_v55  ;;  %v5760_v55 = vld [vmem:[%s6442_s28 + $0x22c] ss:$16 sps:$4 sm:$0xff]  }
 0x15c   : > { %4016 = vmatpush1.bf16.msra.mxu0 %v5737_v46  ;;  %v5793_v46 = vld [vmem:[%s6442_s28 + $0x16c] ss:$16 sps:$4 sm:$0xff]  }
 0x15d   : > { %4069 = vmatpush1.bf16.msra.mxu1 %v5740_v47  ;;  %4017 = vmatprep.subr.bf16.mxu0 %v5745_v48  ;;  %v5796_v47 = vld [vmem:[%s6442_s28 + $0x36c] ss:$16 sps:$4 sm:$0xff]   ;;  %v5791_v48 = vld [vmem:[%s6442_s28 + $0x168] ss:$16 sps:$4 sm:$0xff]  }
 0x15e   : > { %4070 = vmatprep.subr.bf16.mxu1 %v5748_v50  ;;  %v5794_v50 = vld [vmem:[%s6442_s28 + $0x368] ss:$16 sps:$4 sm:$0xff]   ;;  %v5997_v39 = vld [vmem:[%s6442_s28 + $0x92c] ss:$16 sps:$4 sm:$0xff]  }
 0x160   : > { %4018 = vmatpush1.bf16.msra.mxu0 %v5743_v60  ;;  %v5799_v60 = vld [vmem:[%s6442_s28 + $0x14c] ss:$16 sps:$4 sm:$0xff]  }
 0x161   : > { %4071 = vmatpush1.bf16.msra.mxu1 %v5746_v61  ;;  %4019 = vmatprep.subr.bf16.mxu0 %v5751_v0  ;;  %v5802_v61 = vld [vmem:[%s6442_s28 + $0x34c] ss:$16 sps:$4 sm:$0xff]   ;;  %v5797_v0 = vld [vmem:[%s6442_s28 + $0x148] ss:$16 sps:$4 sm:$0xff]  }
 0x162   : > { %4072 = vmatprep.subr.bf16.mxu1 %v5754_v1  ;;  %v5800_v1 = vld [vmem:[%s6442_s28 + $0x348] ss:$16 sps:$4 sm:$0xff]  }
 0x164   : > { %4020 = vmatpush1.bf16.msra.mxu0 %v5749_v2  ;;  %v5805_v2 = vld [vmem:[%s6442_s28 + $0x12c] ss:$16 sps:$4 sm:$0xff]  }
 0x165   : > { %4073 = vmatpush1.bf16.msra.mxu1 %v5752_v3  ;;  %4021 = vmatprep.subr.bf16.mxu0 %v5757_v53  ;;  %v5808_v3 = vld [vmem:[%s6442_s28 + $0x32c] ss:$16 sps:$4 sm:$0xff]   ;;  %v5803_v53 = vld [vmem:[%s6442_s28 + $0x128] ss:$16 sps:$4 sm:$0xff]  }
 0x166   : > { %4074 = vmatprep.subr.bf16.mxu1 %v5760_v55  ;;  %v5806_v55 = vld [vmem:[%s6442_s28 + $0x328] ss:$16 sps:$4 sm:$0xff]  }
 0x168   : > { %4022 = vmatpush1.bf16.msra.mxu0 %v5755_v4  ;;  %v5811_v4 = vld [vmem:[%s6442_s28 + $0x10c] ss:$16 sps:$4 sm:$0xff]  }
 0x169   : > { %4075 = vmatpush1.bf16.msra.mxu1 %v5758_v5  ;;  %4023 = vmatprep.subr.bf16.mxu0 %v5763_v6  ;;  %v5814_v5 = vld [vmem:[%s6442_s28 + $0x30c] ss:$16 sps:$4 sm:$0xff]   ;;  %v5809_v6 = vld [vmem:[%s6442_s28 + $0x108] ss:$16 sps:$4 sm:$0xff]  }
 0x16a   : > { %4076 = vmatprep.subr.bf16.mxu1 %v5766_v7  ;;  %v5812_v7 = vld [vmem:[%s6442_s28 + $0x308] ss:$16 sps:$4 sm:$0xff]  }
 0x16c   : > { %4024 = vmatpush1.bf16.msra.mxu0 %v5761_v10  ;;  %v5817_v10 = vld [vmem:[%s6442_s28 + $0x4ec] ss:$16 sps:$4 sm:$0xff]  }
 0x16d   : > { %4077 = vmatpush1.bf16.msra.mxu1 %v5764_v11  ;;  %4025 = vmatprep.subr.bf16.mxu0 %v5769_v12  ;;  %v5820_v11 = vld [vmem:[%s6442_s28 + $0x6ec] ss:$16 sps:$4 sm:$0xff]   ;;  %v5815_v12 = vld [vmem:[%s6442_s28 + $0x4e8] ss:$16 sps:$4 sm:$0xff]  }
 0x16e   : > { %4078 = vmatprep.subr.bf16.mxu1 %v5772_v13  ;;  %v5818_v13 = vld [vmem:[%s6442_s28 + $0x6e8] ss:$16 sps:$4 sm:$0xff]  }
 0x170   : > { %4026 = vmatpush2.bf16.msra.mxu0 %v5767_v14  ;;  %v5823_v14 = vld [vmem:[%s6442_s28 + $0x4cc] ss:$16 sps:$4 sm:$0xff]  }
 0x171   : > { %4079 = vmatpush2.bf16.msra.mxu1 %v5770_v15  ;;  %4027 = vmatprep.subr.bf16.mxu0 %v5775_v20  ;;  %v5826_v15 = vld [vmem:[%s6442_s28 + $0x6cc] ss:$16 sps:$4 sm:$0xff]   ;;  %v5821_v20 = vld [vmem:[%s6442_s28 + $0x4c8] ss:$16 sps:$4 sm:$0xff]  }
 0x172   : > { %4080 = vmatprep.subr.bf16.mxu1 %v5778_v21  ;;  %v5824_v21 = vld [vmem:[%s6442_s28 + $0x6c8] ss:$16 sps:$4 sm:$0xff]  }
 0x174   : > { %4028 = vmatpush2.bf16.msra.mxu0 %v5773_v54  ;;  %v5829_v54 = vld [vmem:[%s6442_s28 + $0x4ac] ss:$16 sps:$4 sm:$0xff]  }
 0x175   : > { %4081 = vmatpush2.bf16.msra.mxu1 %v5776_v58  ;;  %4029 = vmatprep.subr.bf16.mxu0 %v5781_v27  ;;  %v5832_v58 = vld [vmem:[%s6442_s28 + $0x6ac] ss:$16 sps:$4 sm:$0xff]   ;;  %v5827_v27 = vld [vmem:[%s6442_s28 + $0x4a8] ss:$16 sps:$4 sm:$0xff]  }
 0x176   : > { %4082 = vmatprep.subr.bf16.mxu1 %v5784_v30  ;;  %v5830_v30 = vld [vmem:[%s6442_s28 + $0x6a8] ss:$16 sps:$4 sm:$0xff]  }
 0x178   : > { %4030 = vmatpush2.bf16.msra.mxu0 %v5779_v31  ;;  %v5833_v31 = vld [vmem:[%s6442_s28 + $0x488] ss:$16 sps:$4 sm:$0xff]  }
 0x179   : > { %4083 = vmatpush2.bf16.msra.mxu1 %v5782_v23  ;;  %4031 = vmatprep.subr.bf16.mxu0 %v5787_v25  ;;  %v5836_v23 = vld [vmem:[%s6442_s28 + $0x688] ss:$16 sps:$4 sm:$0xff]   ;;  %v5847_v25 = vld [vmem:[%s6442_s28 + $0x44c] ss:$16 sps:$4 sm:$0xff]  }
 0x17a   : > { %4084 = vmatprep.subr.bf16.mxu1 %v5790_v38  ;;  %v5850_v38 = vld [vmem:[%s6442_s28 + $0x64c] ss:$16 sps:$4 sm:$0xff]  }
 0x17c   : > { %4032 = vmatpush2.bf16.msra.mxu0 %v5785_v44  ;;  %v5845_v44 = vld [vmem:[%s6442_s28 + $0x448] ss:$16 sps:$4 sm:$0xff]  }
 0x17d   : > { %4085 = vmatpush2.bf16.msra.mxu1 %v5788_v45  ;;  %4033 = vmatprep.subr.bf16.mxu0 %v5793_v46  ;;  %v5856_v45 = vld [vmem:[%s6442_s28 + $0x62c] ss:$16 sps:$4 sm:$0xff]   ;;  %v5851_v46 = vld [vmem:[%s6442_s28 + $0x428] ss:$16 sps:$4 sm:$0xff]  }
 0x17e   : > { %4086 = vmatprep.subr.bf16.mxu1 %v5796_v47  ;;  %v5854_v47 = vld [vmem:[%s6442_s28 + $0x628] ss:$16 sps:$4 sm:$0xff]  }
 0x180   : > { %4034 = vmatpush2.bf16.msra.mxu0 %v5791_v48  ;;  %v5859_v48 = vld [vmem:[%s6442_s28 + $0x40c] ss:$16 sps:$4 sm:$0xff]  }
 0x181   : > { %4087 = vmatpush2.bf16.msra.mxu1 %v5794_v50  ;;  %4035 = vmatprep.subr.bf16.mxu0 %v5799_v60  ;;  %v5862_v50 = vld [vmem:[%s6442_s28 + $0x60c] ss:$16 sps:$4 sm:$0xff]   ;;  %v5857_v60 = vld [vmem:[%s6442_s28 + $0x408] ss:$16 sps:$4 sm:$0xff]  }
 0x182   : > { %4088 = vmatprep.subr.bf16.mxu1 %v5802_v61  ;;  %v5860_v61 = vld [vmem:[%s6442_s28 + $0x608] ss:$16 sps:$4 sm:$0xff]  }
 0x184   : > { %4036 = vmatpush2.bf16.msra.mxu0 %v5797_v0  ;;  %v5865_v0 = vld [vmem:[%s6442_s28 + $0x5ec] ss:$16 sps:$4 sm:$0xff]  }
 0x185   : > { %4089 = vmatpush2.bf16.msra.mxu1 %v5800_v1  ;;  %4037 = vmatprep.subr.bf16.mxu0 %v5805_v2  ;;  %v5868_v1 = vld [vmem:[%s6442_s28 + $0x7ec] ss:$16 sps:$4 sm:$0xff]   ;;  %v5863_v2 = vld [vmem:[%s6442_s28 + $0x5e8] ss:$16 sps:$4 sm:$0xff]  }
 0x186   : > { %4090 = vmatprep.subr.bf16.mxu1 %v5808_v3  ;;  %v5866_v3 = vld [vmem:[%s6442_s28 + $0x7e8] ss:$16 sps:$4 sm:$0xff]  }
 0x188   : > { %4038 = vmatpush2.bf16.msra.mxu0 %v5803_v53  ;;  %v5871_v53 = vld [vmem:[%s6442_s28 + $0x5cc] ss:$16 sps:$4 sm:$0xff]  }
 0x189   : > { %4091 = vmatpush2.bf16.msra.mxu1 %v5806_v55  ;;  %4039 = vmatprep.subr.bf16.mxu0 %v5811_v4  ;;  %v5874_v55 = vld [vmem:[%s6442_s28 + $0x7cc] ss:$16 sps:$4 sm:$0xff]   ;;  %v5869_v4 = vld [vmem:[%s6442_s28 + $0x5c8] ss:$16 sps:$4 sm:$0xff]  }
 0x18a   : > { %4092 = vmatprep.subr.bf16.mxu1 %v5814_v5  ;;  %v5872_v5 = vld [vmem:[%s6442_s28 + $0x7c8] ss:$16 sps:$4 sm:$0xff]  }
 0x18c   : > { %4040 = vmatpush2.bf16.msra.mxu0 %v5809_v6  ;;  %v5877_v6 = vld [vmem:[%s6442_s28 + $0x5ac] ss:$16 sps:$4 sm:$0xff]  }
 0x18d   : > { %4093 = vmatpush2.bf16.msra.mxu1 %v5812_v7  ;;  %4115 = vmatprep.subr.bf16.mxu0 %v5817_v10  ;;  %v5880_v7 = vld [vmem:[%s6442_s28 + $0x7ac] ss:$16 sps:$4 sm:$0xff]   ;;  %v5875_v10 = vld [vmem:[%s6442_s28 + $0x5a8] ss:$16 sps:$4 sm:$0xff]  }
 0x18e   : > { %4168 = vmatprep.subr.bf16.mxu1 %v5820_v11  ;;  %v5878_v11 = vld [vmem:[%s6442_s28 + $0x7a8] ss:$16 sps:$4 sm:$0xff]  }
 0x18f   : > { %4042 = vmatmul.mubr.bf16.vlgmr.msra.gmra.mxu0 %v6520_v8  ;;  %v5835_v8 = vld [vmem:[%s6442_s28 + $0x48c] ss:$16 sps:$4 sm:$0xff]  }
 0x190   : > { %4095 = vmatmul.mubr.bf16.vlgmr.msra.gmra.mxu1 %v6522_v9  ;;  %4116 = vmatpush1.bf16.msra.mxu0 %v5815_v12  ;;  %v5838_v9 = vld [vmem:[%s6442_s28 + $0x68c] ss:$16 sps:$4 sm:$0xff]  }
 0x191   : > { %4169 = vmatpush1.bf16.msra.mxu1 %v5818_v13  ;;  %4117 = vmatprep.subr.bf16.mxu0 %v5823_v14  ;;  %v5883_v12 = vld [vmem:[%s6442_s28 + $0x58c] ss:$16 sps:$4 sm:$0xff]   ;;  %v6968_v14 = vpop.f32.mrf.mxu0 }
 0x192   : > { %4170 = vmatprep.subr.bf16.mxu1 %v5826_v15  ;;  %4051 = vmatprep.mubr.bf16.mxu0 %v6545_v33  ;;  %v5841_v33 = vld [vmem:[%s6442_s28 + $0x46c] ss:$16 sps:$4 sm:$0xff]   ;;  %v5881_v15 = vld [vmem:[%s6442_s28 + $0x588] ss:$16 sps:$4 sm:$0xff]  }
 0x193   : > { %4104 = vmatprep.mubr.bf16.mxu1 %v6547_v34  ;;  %v5844_v34 = vld [vmem:[%s6442_s28 + $0x66c] ss:$16 sps:$4 sm:$0xff]  }
 0x194   : > { %4118 = vmatpush1.bf16.msra.mxu0 %v5821_v20  ;;  %v5886_v13 = vld [vmem:[%s6442_s28 + $0x78c] ss:$16 sps:$4 sm:$0xff]   ;;  %v5884_v20 = vld [vmem:[%s6442_s28 + $0x788] ss:$16 sps:$4 sm:$0xff]  }
 0x195   : > { %4171 = vmatpush1.bf16.msra.mxu1 %v5824_v21  ;;  %4119 = vmatprep.subr.bf16.mxu0 %v5829_v54  ;;  %v5889_v21 = vld [vmem:[%s6442_s28 + $0x56c] ss:$16 sps:$4 sm:$0xff]  }
 0x196   : > { %4172 = vmatprep.subr.bf16.mxu1 %v5832_v58  ;;  %v5892_v54 = vld [vmem:[%s6442_s28 + $0x76c] ss:$16 sps:$4 sm:$0xff]   ;;  %v6974_v58 = vpop.f32.mrf.mxu1 }
 0x197   : > { %4052 = vmatmul.mubr.bf16.gmra.mxu0 %v6549_v35  ;;  %v5839_v35 = vld [vmem:[%s6442_s28 + $0x468] ss:$16 sps:$4 sm:$0xff]  }
 0x198   : > { %4105 = vmatmul.mubr.bf16.gmra.mxu1 %v6552_v37  ;;  %4120 = vmatpush1.bf16.msra.mxu0 %v5827_v27  ;;  %v5842_v37 = vld [vmem:[%s6442_s28 + $0x668] ss:$16 sps:$4 sm:$0xff]   ;;  %v6976_v27 = vpop.f32.mrf.mxu0 }
 0x199   : > { %4173 = vmatpush1.bf16.msra.mxu1 %v5830_v30  ;;  %4121 = vmatprep.subr.bf16.mxu0 %v5835_v8  ;;  %v5887_v30 = vld [vmem:[%s6442_s28 + $0x568] ss:$16 sps:$4 sm:$0xff]  }
 0x19a   : > { %4174 = vmatprep.subr.bf16.mxu1 %v5838_v9  ;;  %4147 = vmatprep.mubr.bf16.mxu0 %v6574_v49  ;;  %v5848_v49 = vld [vmem:[%s6442_s28 + $0x648] ss:$16 sps:$4 sm:$0xff]   ;;  %v5895_v9 = vld [vmem:[%s6442_s28 + $0x54c] ss:$16 sps:$4 sm:$0xff]  }
 0x19b   : > { %4200 = vmatprep.mubr.bf16.mxu1 %v6580_v51  ;;  %v5853_v51 = vld [vmem:[%s6442_s28 + $0x42c] ss:$16 sps:$4 sm:$0xff]   ;;  %v5890_v8 = vld [vmem:[%s6442_s28 + $0x768] ss:$16 sps:$4 sm:$0xff]  }
 0x19c   : > { %4122 = vmatpush1.bf16.msra.mxu0 %v5833_v31  ;;  %v5898_v31 = vld [vmem:[%s6442_s28 + $0x74c] ss:$16 sps:$4 sm:$0xff]  }
 0x19d   : > { %4175 = vmatpush1.bf16.msra.mxu1 %v5836_v23  ;;  %4123 = vmatprep.subr.bf16.mxu0 %v5841_v33  ;;  %v6982_v23 = vpop.f32.mrf.mxu1  ;;  %v6984_v33 = vpop.f32.mrf.mxu0 }
 0x19e   : > { %4176 = vmatprep.subr.bf16.mxu1 %v5844_v34  ;;  %v5893_v34 = vld [vmem:[%s6442_s28 + $0x548] ss:$16 sps:$4 sm:$0xff]  }
 0x1a0   : > { %4124 = vmatpush1.bf16.msra.mxu0 %v5839_v35  ;;  %v5896_v35 = vld [vmem:[%s6442_s28 + $0x748] ss:$16 sps:$4 sm:$0xff]  }
 0x1a1   : > { %4177 = vmatpush1.bf16.msra.mxu1 %v5842_v37  ;;  %4125 = vmatprep.subr.bf16.mxu0 %v5847_v25  ;;  %v5901_v37 = vld [vmem:[%s6442_s28 + $0x52c] ss:$16 sps:$4 sm:$0xff]  }
 0x1a2   : > { %4178 = vmatprep.subr.bf16.mxu1 %v5850_v38  ;;  %v5904_v25 = vld [vmem:[%s6442_s28 + $0x72c] ss:$16 sps:$4 sm:$0xff]   ;;  %v6990_v38 = vpop.f32.mrf.mxu1 }
 0x1a4   : > { %4126 = vmatpush1.bf16.msra.mxu0 %v5845_v44  ;;  %v6992_v44 = vpop.f32.mrf.mxu0 }
 0x1a5   : > { %4179 = vmatpush1.bf16.msra.mxu1 %v5848_v49  ;;  %4127 = vmatprep.subr.bf16.mxu0 %v5853_v51  ;;  %v5899_v49 = vld [vmem:[%s6442_s28 + $0x528] ss:$16 sps:$4 sm:$0xff]  }
 0x1a6   : > { %4180 = vmatprep.subr.bf16.mxu1 %v5856_v45  ;;  %v5902_v51 = vld [vmem:[%s6442_s28 + $0x728] ss:$16 sps:$4 sm:$0xff]   ;;  %v6996_v45 = vpop.f32.mrf.mxu0 }
 0x1a8   : > { %4128 = vmatpush1.bf16.msra.mxu0 %v5851_v46  ;;  %v5907_v46 = vld [vmem:[%s6442_s28 + $0x50c] ss:$16 sps:$4 sm:$0xff]  }
 0x1a9   : > { %4181 = vmatpush1.bf16.msra.mxu1 %v5854_v47  ;;  %4129 = vmatprep.subr.bf16.mxu0 %v5859_v48  ;;  %v5910_v47 = vld [vmem:[%s6442_s28 + $0x70c] ss:$16 sps:$4 sm:$0xff]   ;;  %v7000_v48 = vpop.f32.mrf.mxu1 }
 0x1aa   : > { %4182 = vmatprep.subr.bf16.mxu1 %v5862_v50  ;;  %v5905_v50 = vld [vmem:[%s6442_s28 + $0x508] ss:$16 sps:$4 sm:$0xff]  }
 0x1ac   : > { %4130 = vmatpush1.bf16.msra.mxu0 %v5857_v60  ;;  %v5908_v60 = vld [vmem:[%s6442_s28 + $0x708] ss:$16 sps:$4 sm:$0xff]  }
 0x1ad   : > { %4183 = vmatpush1.bf16.msra.mxu1 %v5860_v61  ;;  %4131 = vmatprep.subr.bf16.mxu0 %v5865_v0  ;;  %v7004_v61 = vpop.f32.mrf.mxu1  ;;  %v7006_v0 = vpop.f32.mrf.mxu0 }
 0x1ae   : > { %4184 = vmatprep.subr.bf16.mxu1 %v5868_v1  ;;  %v5913_v1 = vld [vmem:[%s6442_s28 + $0x8ec] ss:$16 sps:$4 sm:$0xff]  }
 0x1b0   : > { %4132 = vmatpush2.bf16.msra.mxu0 %v5863_v2  ;;  %v5916_v2 = vld [vmem:[%s6442_s28 + $0xaec] ss:$16 sps:$4 sm:$0xff]  }
 0x1b1   : > { %4185 = vmatpush2.bf16.msra.mxu1 %v5866_v3  ;;  %4133 = vmatprep.subr.bf16.mxu0 %v5871_v53  ;;  %v5911_v3 = vld [vmem:[%s6442_s28 + $0x8e8] ss:$16 sps:$4 sm:$0xff]  }
 0x1b2   : > { %4186 = vmatprep.subr.bf16.mxu1 %v5874_v55  ;;  %v5914_v53 = vld [vmem:[%s6442_s28 + $0xae8] ss:$16 sps:$4 sm:$0xff]   ;;  %v7012_v55 = vpop.f32.mrf.mxu1 }
 0x1b4   : > { %4134 = vmatpush2.bf16.msra.mxu0 %v5869_v4  ;;  %v7014_v4 = vpop.f32.mrf.mxu0 }
 0x1b5   : > { %4187 = vmatpush2.bf16.msra.mxu1 %v5872_v5  ;;  %4135 = vmatprep.subr.bf16.mxu0 %v5877_v6  ;;  %v5919_v5 = vld [vmem:[%s6442_s28 + $0x8cc] ss:$16 sps:$4 sm:$0xff]  }
 0x1b6   : > { %4188 = vmatprep.subr.bf16.mxu1 %v5880_v7  ;;  %v5922_v6 = vld [vmem:[%s6442_s28 + $0xacc] ss:$16 sps:$4 sm:$0xff]   ;;  %v5917_v7 = vld [vmem:[%s6442_s28 + $0x8c8] ss:$16 sps:$4 sm:$0xff]  }
 0x1b8   : > { %4136 = vmatpush2.bf16.msra.mxu0 %v5875_v10  ;;  %v5920_v10 = vld [vmem:[%s6442_s28 + $0xac8] ss:$16 sps:$4 sm:$0xff]  }
 0x1b9   : > { %4189 = vmatpush2.bf16.msra.mxu1 %v5878_v11  ;;  %4137 = vmatprep.subr.bf16.mxu0 %v5883_v12  ;;  %v7022_v11 = vpop.f32.mrf.mxu1  ;;  %v7024_v12 = vpop.f32.mrf.mxu0 }
 0x1ba   : > { %4190 = vmatprep.subr.bf16.mxu1 %v5886_v13  ;;  %v5925_v13 = vld [vmem:[%s6442_s28 + $0x8ac] ss:$16 sps:$4 sm:$0xff]  }
 0x1bc   : > { %4138 = vmatpush2.bf16.msra.mxu0 %v5881_v15  ;;  %v5928_v15 = vld [vmem:[%s6442_s28 + $0xaac] ss:$16 sps:$4 sm:$0xff]  }
 0x1bd   : > { %4191 = vmatpush2.bf16.msra.mxu1 %v5884_v20  ;;  %4139 = vmatprep.subr.bf16.mxu0 %v5889_v21  ;;  %v5926_v20 = vld [vmem:[%s6442_s28 + $0xaa8] ss:$16 sps:$4 sm:$0xff]   ;;  %v7034_v21 = vpop.f32.mrf.mxu1 }
 0x1be   : > { %4192 = vmatprep.subr.bf16.mxu1 %v5892_v54  ;;  %v5931_v54 = vld [vmem:[%s6442_s28 + $0x88c] ss:$16 sps:$4 sm:$0xff]  }
 0x1c0   : > { %4140 = vmatpush2.bf16.msra.mxu0 %v5887_v30  ;;  %v5934_v30 = vld [vmem:[%s6442_s28 + $0xa8c] ss:$16 sps:$4 sm:$0xff]  }
 0x1c1   : > { %4193 = vmatpush2.bf16.msra.mxu1 %v5890_v8  ;;  %4141 = vmatprep.subr.bf16.mxu0 %v5895_v9  ;;  %v7038_v8 = vpop.f32.mrf.mxu1  ;;  %v5932_v9 = vld [vmem:[%s6442_s28 + $0xa88] ss:$16 sps:$4 sm:$0xff]  }
 0x1c2   : > { %4194 = vmatprep.subr.bf16.mxu1 %v5898_v31  ;;  %v5937_v31 = vld [vmem:[%s6442_s28 + $0x86c] ss:$16 sps:$4 sm:$0xff]  }
 0x1c4   : > { %4142 = vmatpush2.bf16.msra.mxu0 %v5893_v34  ;;  %v5940_v34 = vld [vmem:[%s6442_s28 + $0xa6c] ss:$16 sps:$4 sm:$0xff]  }
 0x1c5   : > { %4195 = vmatpush2.bf16.msra.mxu1 %v5896_v35  ;;  %4143 = vmatprep.subr.bf16.mxu0 %v5901_v37  ;;  %v5935_v35 = vld [vmem:[%s6442_s28 + $0x868] ss:$16 sps:$4 sm:$0xff]  }
 0x1c6   : > { %4196 = vmatprep.subr.bf16.mxu1 %v5904_v25  ;;  %v5938_v37 = vld [vmem:[%s6442_s28 + $0xa68] ss:$16 sps:$4 sm:$0xff]   ;;  %v5943_v25 = vld [vmem:[%s6442_s28 + $0x84c] ss:$16 sps:$4 sm:$0xff]  }
 0x1c8   : > { %4144 = vmatpush2.bf16.msra.mxu0 %v5899_v49  ;;  %v5946_v49 = vld [vmem:[%s6442_s28 + $0xa4c] ss:$16 sps:$4 sm:$0xff]  }
 0x1c9   : > { %4197 = vmatpush2.bf16.msra.mxu1 %v5902_v51  ;;  %4145 = vmatprep.subr.bf16.mxu0 %v5907_v46  ;;  %v5941_v51 = vld [vmem:[%s6442_s28 + $0x848] ss:$16 sps:$4 sm:$0xff]  }
 0x1ca   : > { %4198 = vmatprep.subr.bf16.mxu1 %v5910_v47  ;;  %v5944_v46 = vld [vmem:[%s6442_s28 + $0xa48] ss:$16 sps:$4 sm:$0xff]   ;;  %v5949_v47 = vld [vmem:[%s6442_s28 + $0x82c] ss:$16 sps:$4 sm:$0xff]  }
 0x1cc   : > { %4146 = vmatpush2.bf16.msra.mxu0 %v5905_v50  ;;  %v5952_v50 = vld [vmem:[%s6442_s28 + $0xa2c] ss:$16 sps:$4 sm:$0xff]  }
 0x1cd   : > { %4199 = vmatpush2.bf16.msra.mxu1 %v5908_v60  ;;  %4221 = vmatprep.subr.bf16.mxu0 %v5913_v1 }
 0x1ce   : > { %4274 = vmatprep.subr.bf16.mxu1 %v5916_v2  ;;  %v5947_v2 = vld [vmem:[%s6442_s28 + $0x828] ss:$16 sps:$4 sm:$0xff]  }
 0x1cf   : > { %4148 = vmatmul.mubr.bf16.vlgmr.msra.gmra.mxu0 %v6624_v32  ;;  %v7030_v32 = vpop.f32.mrf.mxu0 }
 0x1d0   : > { %4201 = vmatmul.mubr.bf16.vlgmr.msra.gmra.mxu1 %v6628_v36  ;;  %4222 = vmatpush1.bf16.msra.mxu0 %v5911_v3  ;;  %v5923_v36 = vld [vmem:[%s6442_s28 + $0x8a8] ss:$16 sps:$4 sm:$0xff]  }
 0x1d1   : > { %4275 = vmatpush1.bf16.msra.mxu1 %v5914_v53  ;;  %4223 = vmatprep.subr.bf16.mxu0 %v5919_v5  ;;  %v5950_v3 = vld [vmem:[%s6442_s28 + $0xa28] ss:$16 sps:$4 sm:$0xff]   ;;  %v5955_v5 = vld [vmem:[%s6442_s28 + $0x80c] ss:$16 sps:$4 sm:$0xff]  }
 0x1d2   : > { %4276 = vmatprep.subr.bf16.mxu1 %v5922_v6  ;;  %4157 = vmatprep.mubr.bf16.mxu0 %v6632_v42  ;;  %v7040_v42 = vpop.f32.mrf.mxu0  ;;  %v5958_v6 = vld [vmem:[%s6442_s28 + $0xa0c] ss:$16 sps:$4 sm:$0xff]  }
 0x1d3   : > { %4210 = vmatprep.mubr.bf16.mxu1 %v6634_v43  ;;  %v5929_v43 = vld [vmem:[%s6442_s28 + $0x888] ss:$16 sps:$4 sm:$0xff]  }
 0x1d4   : > { %4224 = vmatpush1.bf16.msra.mxu0 %v5917_v7 }
 0x1d5   : > { %4277 = vmatpush1.bf16.msra.mxu1 %v5920_v10  ;;  %4225 = vmatprep.subr.bf16.mxu0 %v5925_v13  ;;  %v5953_v10 = vld [vmem:[%s6442_s28 + $0x808] ss:$16 sps:$4 sm:$0xff]  }
 0x1d6   : > { %4278 = vmatprep.subr.bf16.mxu1 %v5928_v15  ;;  %v5956_v13 = vld [vmem:[%s6442_s28 + $0xa08] ss:$16 sps:$4 sm:$0xff]  }
 0x1d7   : > { %4158 = vmatmul.mubr.bf16.gmra.mxu0 %v6650_v56  ;;  %v7050_v56 = vpop.f32.mrf.mxu1 }
 0x1d8   : > { %4211 = vmatmul.mubr.bf16.gmra.mxu1 %v6652_v57  ;;  %4226 = vmatpush1.bf16.msra.mxu0 %v5923_v36  ;;  %v7052_v57 = vpop.f32.mrf.mxu0  ;;  %v5961_v36 = vld [vmem:[%s6442_s28 + $0x9ec] ss:$16 sps:$4 sm:$0xff]  }
 0x1d9   : > { %4279 = vmatpush1.bf16.msra.mxu1 %v5926_v20  ;;  %4227 = vmatprep.subr.bf16.mxu0 %v5931_v54  ;;  %v5964_v20 = vld [vmem:[%s6442_s28 + $0xbec] ss:$16 sps:$4 sm:$0xff]  }
 0x1da   : > { %4280 = vmatprep.subr.bf16.mxu1 %v5934_v30  ;;  %4253 = vmatprep.mubr.bf16.mxu0 %v6662_v62  ;;  %v7058_v62 = vpop.f32.mrf.mxu1  ;;  %v5959_v30 = vld [vmem:[%s6442_s28 + $0x9e8] ss:$16 sps:$4 sm:$0xff]  }
 0x1db   : > { %4306 = vmatprep.mubr.bf16.mxu1 %v6666_v63  ;;  %v7060_v63 = vpop.f32.mrf.mxu0 }
 0x1dc   : > { %4228 = vmatpush1.bf16.msra.mxu0 %v5929_v43  ;;  %v7066_v60 = vpop.f32.mrf.mxu1  ;;  %v5962_v43 = vld [vmem:[%s6442_s28 + $0xbe8] ss:$16 sps:$4 sm:$0xff]  }
 0x1dd   : > { %4281 = vmatpush1.bf16.msra.mxu1 %v5932_v9  ;;  %4229 = vmatprep.subr.bf16.mxu0 %v5937_v31  ;;  %v7068_v1 = vpop.f32.mrf.mxu0  ;;  %v5967_v31 = vld [vmem:[%s6442_s28 + $0x9cc] ss:$16 sps:$4 sm:$0xff]  }
 0x1de   : > { %4282 = vmatprep.subr.bf16.mxu1 %v5940_v34  ;;  %v7072_v53 = vpop.f32.mrf.mxu1  ;;  %v5970_v34 = vld [vmem:[%s6442_s28 + $0xbcc] ss:$16 sps:$4 sm:$0xff]  }
 0x1df   : > { %v7076_v7 = vpop.f32.mrf.mxu0 }
 0x1e0   : > { %4230 = vmatpush1.bf16.msra.mxu0 %v5935_v35  ;;  %v7080_v15 = vpop.f32.mrf.mxu1 }
 0x1e1   : > { %4283 = vmatpush1.bf16.msra.mxu1 %v5938_v37  ;;  %4231 = vmatprep.subr.bf16.mxu0 %v5943_v25  ;;  %v7084_v54 = vpop.f32.mrf.mxu0  ;;  %v5965_v37 = vld [vmem:[%s6442_s28 + $0x9c8] ss:$16 sps:$4 sm:$0xff]  }
 0x1e2   : > { %4284 = vmatprep.subr.bf16.mxu1 %v5946_v49  ;;  %v7088_v9 = vpop.f32.mrf.mxu1  ;;  %v5968_v25 = vld [vmem:[%s6442_s28 + $0xbc8] ss:$16 sps:$4 sm:$0xff]  }
 0x1e3   : > { %v7092_v35 = vpop.f32.mrf.mxu0 }
 0x1e4   : > { %4232 = vmatpush1.bf16.msra.mxu0 %v5941_v51  ;;  %v7096_v49 = vpop.f32.mrf.mxu1 }
 0x1e5   : > { %4285 = vmatpush1.bf16.msra.mxu1 %v5944_v46  ;;  %4233 = vmatprep.subr.bf16.mxu0 %v5949_v47  ;;  %v7098_v51 = vpop.f32.mrf.mxu0  ;;  %v5973_v46 = vld [vmem:[%s6442_s28 + $0x9ac] ss:$16 sps:$4 sm:$0xff]  }
 0x1e6   : > { %4286 = vmatprep.subr.bf16.mxu1 %v5952_v50  ;;  %v5976_v47 = vld [vmem:[%s6442_s28 + $0xbac] ss:$16 sps:$4 sm:$0xff]   ;;  %v7102_v50 = vpop.f32.mrf.mxu1 }
 0x1e8   : > { %4234 = vmatpush1.bf16.msra.mxu0 %v5947_v2  ;;  %v5971_v2 = vld [vmem:[%s6442_s28 + $0x9a8] ss:$16 sps:$4 sm:$0xff]  }
 0x1e9   : > { %4287 = vmatpush1.bf16.msra.mxu1 %v5950_v3  ;;  %4235 = vmatprep.subr.bf16.mxu0 %v5955_v5  ;;  %v5974_v3 = vld [vmem:[%s6442_s28 + $0xba8] ss:$16 sps:$4 sm:$0xff]   ;;  %v7106_v5 = vpop.f32.mrf.mxu0 }
 0x1ea   : > { %4288 = vmatprep.subr.bf16.mxu1 %v5958_v6  ;;  %v5979_v6 = vld [vmem:[%s6442_s28 + $0x98c] ss:$16 sps:$4 sm:$0xff]  }
 0x1ec   : > { %4236 = vmatpush1.bf16.msra.mxu0 %v5953_v10  ;;  %v5982_v10 = vld [vmem:[%s6442_s28 + $0xb8c] ss:$16 sps:$4 sm:$0xff]  }
 0x1ed   : > { %4289 = vmatpush1.bf16.msra.mxu1 %v5956_v13  ;;  %4237 = vmatprep.subr.bf16.mxu0 %v5961_v36  ;;  %v7110_v13 = vpop.f32.mrf.mxu1  ;;  %v5977_v36 = vld [vmem:[%s6442_s28 + $0x988] ss:$16 sps:$4 sm:$0xff]  }
 0x1ee   : > { %4290 = vmatprep.subr.bf16.mxu1 %v5964_v20  ;;  %v5980_v20 = vld [vmem:[%s6442_s28 + $0xb88] ss:$16 sps:$4 sm:$0xff]  }
 0x1f0   : > { %4238 = vmatpush2.bf16.msra.mxu0 %v5959_v30  ;;  %v7114_v30 = vpop.f32.mrf.mxu0 }
 0x1f1   : > { %4291 = vmatpush2.bf16.msra.mxu1 %v5962_v43  ;;  %4239 = vmatprep.subr.bf16.mxu0 %v5967_v31  ;;  %v5985_v43 = vld [vmem:[%s6442_s28 + $0x96c] ss:$16 sps:$4 sm:$0xff]  }
 0x1f2   : > { %4292 = vmatprep.subr.bf16.mxu1 %v5970_v34  ;;  %v5988_v31 = vld [vmem:[%s6442_s28 + $0xb6c] ss:$16 sps:$4 sm:$0xff]   ;;  %v7118_v34 = vpop.f32.mrf.mxu1 }
 0x1f4   : > { %4240 = vmatpush2.bf16.msra.mxu0 %v5965_v37  ;;  %v5983_v37 = vld [vmem:[%s6442_s28 + $0x968] ss:$16 sps:$4 sm:$0xff]  }
 0x1f5   : > { %4293 = vmatpush2.bf16.msra.mxu1 %v5968_v25  ;;  %4241 = vmatprep.subr.bf16.mxu0 %v5973_v46  ;;  %v5986_v25 = vld [vmem:[%s6442_s28 + $0xb68] ss:$16 sps:$4 sm:$0xff]   ;;  %v7122_v46 = vpop.f32.mrf.mxu0 }
 0x1f6   : > { %4294 = vmatprep.subr.bf16.mxu1 %v5976_v47  ;;  %v5991_v47 = vld [vmem:[%s6442_s28 + $0x94c] ss:$16 sps:$4 sm:$0xff]  }
 0x1f8   : > { %4242 = vmatpush2.bf16.msra.mxu0 %v5971_v2  ;;  %v5994_v2 = vld [vmem:[%s6442_s28 + $0xb4c] ss:$16 sps:$4 sm:$0xff]  }
 0x1f9   : > { %4295 = vmatpush2.bf16.msra.mxu1 %v5974_v3  ;;  %4243 = vmatprep.subr.bf16.mxu0 %v5979_v6  ;;  %v7126_v3 = vpop.f32.mrf.mxu1  ;;  %v5989_v6 = vld [vmem:[%s6442_s28 + $0x948] ss:$16 sps:$4 sm:$0xff]  }
 0x1fa   : > { %4296 = vmatprep.subr.bf16.mxu1 %v5982_v10  ;;  %v5992_v10 = vld [vmem:[%s6442_s28 + $0xb48] ss:$16 sps:$4 sm:$0xff]  }
 0x1fc   : > { %4244 = vmatpush2.bf16.msra.mxu0 %v5977_v36  ;;  %v7130_v36 = vpop.f32.mrf.mxu0 }
 0x1fd   : > { %4297 = vmatpush2.bf16.msra.mxu1 %v5980_v20  ;;  %4245 = vmatprep.subr.bf16.mxu0 %v5985_v43  ;;  %v7132_v20 = vpop.f32.mrf.mxu1  ;;  %v6000_v43 = vld [vmem:[%s6442_s28 + $0xb2c] ss:$16 sps:$4 sm:$0xff]  }
 0x1fe   : > { %4298 = vmatprep.subr.bf16.mxu1 %v5988_v31  ;;  %v3673_v31 = vadd.f32 %v6974_v58, %v6968_v14  ;;  %v6003_v14 = vld [vmem:[%s6442_s28 + $0x90c] ss:$16 sps:$4 sm:$0xff]  }
 0x1ff   : > { %v7147_v19 = vpop.f32.mrf.mxu1  ;;  %v6006_v58 = vld [vmem:[%s6442_s28 + $0xb0c] ss:$16 sps:$4 sm:$0xff]  }
 0x200   : > { %4246 = vmatpush2.bf16.msra.mxu0 %v5983_v37  ;;  %v4486_v37 = vlaneseq  ;;  %v3726_v24 = vadd.f32 %v7030_v32, %v3673_v31  ;;  %v3679_v32 = vadd.f32 %v7000_v48, %v6992_v44  ;;  %v3683_v44 = vadd.f32 %v7004_v61, %v6996_v45 }
 0x201   : > { %4299 = vmatpush2.bf16.msra.mxu1 %v5986_v25  ;;  %4247 = vmatprep.subr.bf16.mxu0 %v5991_v47  ;;  %v3675_v25 = vadd.f32 %v6982_v23, %v6976_v27  ;;  %v3677_v47 = vadd.f32 %v6990_v38, %v6984_v33  ;;  %v7164_v31 = vpop.f32.mrf.mxu1  ;;  %v3685_v48 = vadd.f32 %v7012_v55, %v7006_v0  ;;  %v6010_v0 = vld [vmem:[%s6442_s28 + $0xee8] ss:$16 sps:$4 sm:$0xff]  }
 0x202   : > { %4300 = vmatprep.subr.bf16.mxu1 %v5994_v2  ;;  %v7145_v2 = vpop.f32.mrf.mxu0  ;;  %v7153_v23 = vshrl.u32 %v4486_v37, 7  ;;  %v3779_v38 = vadd.f32 %v7038_v8, %v3726_v24  ;;  %v6012_v37 = vld [vmem:[%s6442_s28 + $0xeec] ss:$16 sps:$4 sm:$0xff]   ;;  %v3687_v45 = vadd.f32 %v7022_v11, %v7014_v4  ;;  %v3736_v61 = vadd.f32 %v7068_v1, %v3683_v44 }
 0x203   : > { %v3728_v27 = vadd.f32 %v7040_v42, %v3675_v25  ;;  %v3730_v33 = vadd.f32 %v7052_v57, %v3677_v47  ;;  %v6009_v42 = vld [vmem:[%s6442_s28 + $0xcec] ss:$16 sps:$4 sm:$0xff]   ;;  %v7176_v57 = vld [vmem:[%s250_s20] sm:$0xf]  ;;  %v3689_v1 = vadd.f32 %v7034_v21, %v7024_v12 }
 0x204   : > { %4248 = vmatpush2.bf16.msra.mxu0 %v5989_v6  ;;  %v6004_v6 = vld [vmem:[%s6442_s28 + $0xb08] ss:$16 sps:$4 sm:$0xff]   ;;  %v4488_v24 = vsub.s32 0, %v7153_v23  ;;  %v6015_v4 = vld [vmem:[%s6442_s28 + $0xccc] ss:$16 sps:$4 sm:$0xff]   ;;  %v3789_v12 = vadd.f32 %v7072_v53, %v3736_v61 }
 0x205   : > { %4301 = vmatpush2.bf16.msra.mxu1 %v5992_v10  ;;  %4249 = vmatprep.subr.bf16.mxu0 %v5997_v39  ;;  %v6001_v39 = vld [vmem:[%s6442_s28 + $0x908] ss:$16 sps:$4 sm:$0xff]   ;;  %v3732_v10 = vadd.f32 %v7060_v63, %v3679_v32  ;;  %v3783_v8 = vadd.f32 %v7058_v62, %v3730_v33  ;;  %v4492_v63 = vsub.s32 1, %v7153_v23  ;;  %v3738_v62 = vadd.f32 %v7076_v7, %v3685_v48  ;;  %v6018_v11 = vld [vmem:[%s6442_s28 + $0xecc] ss:$16 sps:$4 sm:$0xff]  }
 0x206   : > { %4302 = vmatprep.subr.bf16.mxu1 %v6000_v43  ;;  %v7162_v43 = vpop.f32.mrf.mxu0  ;;  %v3740_v7 = vadd.f32 %v7084_v54, %v3687_v45  ;;  %v6013_v54 = vld [vmem:[%s6442_s28 + $0xcc8] ss:$16 sps:$4 sm:$0xff]   ;;  %v6021_v53 = vld [vmem:[%s6442_s28 + $0xcac] ss:$16 sps:$4 sm:$0xff]  }
 0x207   : > { %v3785_v55 = vadd.f32 %v7066_v60, %v3732_v10  ;;  %v3836_v25 = vadd.f32 %v7114_v30, %v3783_v8  ;;  %v7198_v60 = vrot.slane %v7176_v57, %v4488_v24  ;;  %v7205_v32 = vrot.slane %v7176_v57, %v4492_v63  ;;  %v6022_v24 = vld [vmem:[%s6442_s28 + $0xea8] ss:$16 sps:$4 sm:$0xff]   ;;  %v6030_v8 = vld [vmem:[%s6442_s28 + $0xe8c] ss:$16 sps:$4 sm:$0xff]  }
 0x208   : > { %4250 = vmatpush2.bf16.msra.mxu0 %v5995_v26  ;;  %v3781_v26 = vadd.f32 %v7050_v56, %v3728_v27  ;;  %v7188_v47 = vpop.f32.mrf.mxu0  ;;  %v3791_v33 = vadd.f32 %v7080_v15, %v3738_v62  ;;  %v3793_v15 = vadd.f32 %v7088_v9, %v3740_v7 }
 0x209   : > { %4303 = vmatpush2.bf16.msra.mxu1 %v5998_v59  ;;  %4251 = vmatprep.subr.bf16.mxu0 %v6003_v14  ;;  %v3832_v59 = vadd.f32 %v7098_v51, %v3779_v38  ;;  %v6007_v51 = vld [vmem:[%s6442_s28 + $0xce8] ss:$16 sps:$4 sm:$0xff]   ;;  %v7190_v14 = vpop.f32.mrf.mxu1  ;;  %v3838_v30 = vadd.f32 %v7122_v46, %v3785_v55 }
 0x20a   : > { %4304 = vmatprep.subr.bf16.mxu1 %v6006_v58  ;;  %v3834_v56 = vadd.f32 %v7106_v5, %v3781_v26  ;;  %v6016_v46 = vld [vmem:[%s6442_s28 + $0xec8] ss:$16 sps:$4 sm:$0xff]   ;;  %v3846_v9 = vadd.f32 %v7162_v43, %v3793_v15 }
 0x20b   : > { %v3885_v5 = vadd.f32 %v7102_v50, %v3832_v59  ;;  %v6046_v15 = vld [vmem:[%s6442_s28 + $0xe28] ss:$16 sps:$4 sm:$0xff]  }
 0x20c   : > { %4252 = vmatpush2.bf16.msra.mxu0 %v6001_v39  ;;  %v3887_v21 = vadd.f32 %v7110_v13, %v3834_v56  ;;  %v3842_v13 = vadd.f32 %v7130_v36, %v3789_v12 }
 0x20d   : > { %4305 = vmatpush2.bf16.msra.mxu1 %v6004_v6  ;;  %4327 = vmatprep.subr.bf16.mxu0 %v6009_v42  ;;  %v6024_v6 = vld [vmem:[%s6442_s28 + $0xeac] ss:$16 sps:$4 sm:$0xff]  }
 0x20e   : > { %4380 = vmatprep.subr.bf16.mxu1 %v6012_v37  ;;  %v3895_v63 = vadd.f32 %v7132_v20, %v3842_v13  ;;  %v6045_v13 = vld [vmem:[%s6442_s28 + $0xc2c] ss:$16 sps:$4 sm:$0xff]  }
 0x20f   : > { %v3937_v58 = vpop.f32.mrf.mxu0  ;;  %4254 = vmatmul.mubr.bf16.vlgmr.msra.gmra.mxu0 %v6728_v16  ;;  %v3742_v16 = vadd.f32 %v7092_v35, %v3689_v1  ;;  %v3891_v35 = vadd.f32 %v7126_v3, %v3838_v30  ;;  %v6036_v1 = vld [vmem:[%s6442_s28 + $0xe6c] ss:$16 sps:$4 sm:$0xff]  }
 0x210   : > { %v3990_v27 = vpop.f32.mrf.mxu1  ;;  %4307 = vmatmul.mubr.bf16.vlgmr.msra.gmra.mxu1 %v6732_v17  ;;  %v3938_v50 = vadd.f32 %v3937_v58, %v3885_v5  ;;  %4328 = vmatpush1.bf16.msra.mxu0 %v6007_v51  ;;  %v3889_v17 = vadd.f32 %v7118_v34, %v3836_v25  ;;  %v3844_v34 = vadd.f32 %v7145_v2, %v3791_v33  ;;  %v6027_v2 = vld [vmem:[%s6442_s28 + $0xc8c] ss:$16 sps:$4 sm:$0xff]   ;;  %v6025_v25 = vld [vmem:[%s6442_s28 + $0xc88] ss:$16 sps:$4 sm:$0xff]  }
 0x211   : > { %4381 = vmatpush1.bf16.msra.mxu1 %v6010_v0  ;;  %v3939_v38 = vpop.f32.mrf.mxu0  ;;  %4329 = vmatprep.subr.bf16.mxu0 %v6015_v4 }
 0x212   : > { %v3992_v39 = vpop.f32.mrf.mxu1  ;;  %4382 = vmatprep.subr.bf16.mxu1 %v6018_v11  ;;  %v3991_v10 = vadd.f32 %v3990_v27, %v3938_v50  ;;  %v3940_v42 = vadd.f32 %v3939_v38, %v3887_v21  ;;  %4263 = vmatprep.mubr.bf16.mxu0 %v6736_v22  ;;  %v6019_v22 = vld [vmem:[%s6442_s28 + $0xca8] ss:$16 sps:$4 sm:$0xff]   ;;  %v3897_v61 = vadd.f32 %v7147_v19, %v3844_v34  ;;  %v6033_v11 = vld [vmem:[%s6442_s28 + $0xc6c] ss:$16 sps:$4 sm:$0xff]  }
 0x213   : > { %4316 = vmatprep.mubr.bf16.mxu1 %v6738_v52  ;;  %v3941_v37 = vpop.f32.mrf.mxu0  ;;  %v3795_v52 = vadd.f32 %v7096_v49, %v3742_v16  ;;  %v6028_v19 = vld [vmem:[%s6442_s28 + $0xe88] ss:$16 sps:$4 sm:$0xff]   ;;  %v6054_v34 = vld [vmem:[%s6442_s28 + $0xe0c] ss:$16 sps:$4 sm:$0xff]  }
 0x214   : > { %v3994_v44 = vpop.f32.mrf.mxu1  ;;  %v4506_v26 = vadd.f32 %v7198_v60, %v3991_v10  ;;  %v3993_v36 = vadd.f32 %v3992_v39, %v3940_v42  ;;  %v3942_v59 = vadd.f32 %v3941_v37, %v3889_v17  ;;  %4330 = vmatpush1.bf16.msra.mxu0 %v6013_v54  ;;  %v6031_v50 = vld [vmem:[%s6442_s28 + $0xc68] ss:$16 sps:$4 sm:$0xff]   ;;  %v6048_v10 = vld [vmem:[%s6442_s28 + $0xe2c] ss:$16 sps:$4 sm:$0xff]  }
 0x215   : > { %4383 = vmatpush1.bf16.msra.mxu1 %v6016_v46  ;;  %v3943_v3 = vpop.f32.mrf.mxu0  ;;  %4331 = vmatprep.subr.bf16.mxu0 %v6021_v53  ;;  %v3848_v56 = vadd.f32 %v7188_v47, %v3795_v52  ;;  %v3899_v47 = vadd.f32 %v7164_v31, %v3846_v9  ;;  %v6034_v54 = vld [vmem:[%s6442_s28 + $0xe68] ss:$16 sps:$4 sm:$0xff]   ;;  %v6042_v46 = vld [vmem:[%s6442_s28 + $0xe4c] ss:$16 sps:$4 sm:$0xff]  }
 0x216   : > { %v3996_v48 = vpop.f32.mrf.mxu1  ;;  %4384 = vmatprep.subr.bf16.mxu1 %v6024_v6  ;;  %4522 = vst [vmem:[%s7233_s27] sm:$0xff] %v4506_v26  ;;  %v4507_v45 = vadd.f32 %v7205_v32, %v3993_v36  ;;  %v3995_v49 = vadd.f32 %v3994_v44, %v3942_v59  ;;  %v3944_v43 = vadd.f32 %v3943_v3, %v3891_v35  ;;  %v6037_v53 = vld [vmem:[%s6442_s28 + $0xc48] ss:$16 sps:$4 sm:$0xff]   ;;  %v6051_v35 = vld [vmem:[%s6442_s28 + $0xc0c] ss:$16 sps:$4 sm:$0xff]  }
 0x217   : > { %v3947_v51 = vpop.f32.mrf.mxu0  ;;  %4264 = vmatmul.mubr.bf16.gmra.mxu0 %v6754_v28  ;;  %v3901_v31 = vadd.f32 %v7190_v14, %v3848_v56  ;;  %v6039_v14 = vld [vmem:[%s6442_s28 + $0xc4c] ss:$16 sps:$4 sm:$0xff]   ;;  %v6040_v6 = vld [vmem:[%s6442_s28 + $0xe48] ss:$16 sps:$4 sm:$0xff]  }
 0x218   : > { %v4000_v20 = vpop.f32.mrf.mxu1  ;;  %4317 = vmatmul.mubr.bf16.gmra.mxu1 %v6756_v29  ;;  %4523 = vst [vmem:[%s7233_s27 + $0x8] sm:$0xff] %v4507_v45  ;;  %v4510_v0 = vadd.f32 %v7198_v60, %v3995_v49  ;;  %v3997_v55 = vadd.f32 %v3996_v48, %v3944_v43  ;;  %v3948_v62 = vadd.f32 %v3947_v51, %v3895_v63  ;;  %v6049_v37 = vld [vmem:[%s6442_s28 + $0xc08] ss:$16 sps:$4 sm:$0xff]   ;;  %v6057_v44 = vld [vmem:[%s6442_s28 + $0xdec] ss:$16 sps:$4 sm:$0xff]  }
 0x219   : > { %4332 = vmatpush1.bf16.msra.mxu0 %v6019_v22  ;;  %4385 = vmatpush1.bf16.msra.mxu1 %v6022_v24  ;;  %v3949_v4 = vpop.f32.mrf.mxu0  ;;  %v6060_v26 = vld [vmem:[%s6442_s28 + $0xfec] ss:$16 sps:$4 sm:$0xff]   ;;  %v6055_v36 = vld [vmem:[%s6442_s28 + $0xde8] ss:$16 sps:$4 sm:$0xff]  }
 0x21a   : > { %v4002_v28 = vpop.f32.mrf.mxu1  ;;  %4333 = vmatprep.subr.bf16.mxu0 %v6027_v2  ;;  %4386 = vmatprep.subr.bf16.mxu1 %v6030_v8  ;;  %4526 = vst [vmem:[%s7233_s27 + $0x20] sm:$0xff] %v4510_v0  ;;  %v4511_v29 = vadd.f32 %v7205_v32, %v3997_v55  ;;  %v3950_v5 = vadd.f32 %v3949_v4, %v3897_v61  ;;  %v6058_v59 = vld [vmem:[%s6442_s28 + $0xfe8] ss:$16 sps:$4 sm:$0xff]   ;;  %v6063_v22 = vld [vmem:[%s6442_s28 + $0xdcc] ss:$16 sps:$4 sm:$0xff]  }
 0x21b   : > { %v4001_v7 = vadd.f32 %v4000_v20, %v3948_v62  ;;  %4359 = vmatprep.mubr.bf16.mxu0 %v6766_v40  ;;  %4412 = vmatprep.mubr.bf16.mxu1 %v6770_v41  ;;  %v3951_v30 = vpop.f32.mrf.mxu0  ;;  %v6066_v24 = vld [vmem:[%s6442_s28 + $0xfcc] ss:$16 sps:$4 sm:$0xff]   ;;  %v6061_v52 = vld [vmem:[%s6442_s28 + $0xdc8] ss:$16 sps:$4 sm:$0xff]  }
 0x21c   : > { %v4004_v58 = vpop.f32.mrf.mxu1  ;;  %4527 = vst [vmem:[%s7233_s27 + $0x28] sm:$0xff] %v4511_v29  ;;  %v3952_v12 = vadd.f32 %v3951_v30, %v3899_v47  ;;  %v4003_v21 = vadd.f32 %v4002_v28, %v3950_v5  ;;  %v6064_v9 = vld [vmem:[%s6442_s28 + $0xfc8] ss:$16 sps:$4 sm:$0xff]   ;;  %v6069_v3 = vld [vmem:[%s6442_s28 + $0xdac] ss:$16 sps:$4 sm:$0xff]  }
 0x21d   : > { %v4514_v27 = vadd.f32 %v7198_v60, %v4001_v7  ;;  %4334 = vmatpush1.bf16.msra.mxu0 %v6025_v25  ;;  %4387 = vmatpush1.bf16.msra.mxu1 %v6028_v19  ;;  %v3953_v40 = vpop.f32.mrf.mxu0  ;;  %v6072_v48 = vld [vmem:[%s6442_s28 + $0xfac] ss:$16 sps:$4 sm:$0xff]   ;;  %v6067_v2 = vld [vmem:[%s6442_s28 + $0xda8] ss:$16 sps:$4 sm:$0xff]  }
 0x21e   : > { %v4006_v41 = vpop.f32.mrf.mxu1  ;;  %4335 = vmatprep.subr.bf16.mxu0 %v6033_v11  ;;  %4388 = vmatprep.subr.bf16.mxu1 %v6036_v1  ;;  %v4515_v33 = vadd.f32 %v7205_v32, %v4003_v21  ;;  %v3954_v16 = vadd.f32 %v3953_v40, %v3901_v31  ;;  %v4005_v17 = vadd.f32 %v4004_v58, %v3952_v12  ;;  %v6070_v8 = vld [vmem:[%s6442_s28 + $0xfa8] ss:$16 sps:$4 sm:$0xff]   ;;  %v6075_v63 = vld [vmem:[%s6442_s28 + $0xd8c] ss:$16 sps:$4 sm:$0xff]   ;;  %v7407_v31 = vld [vmem:[#allocation14_spill] sm:$0xff] }
 0x21f   : > { %4530 = vst [vmem:[%s7233_s27 + $0x40] sm:$0xff] %v4514_v27  ;;  %v6078_v45 = vld [vmem:[%s6442_s28 + $0xf8c] ss:$16 sps:$4 sm:$0xff]   ;;  %v6073_v49 = vld [vmem:[%s6442_s28 + $0xd88] ss:$16 sps:$4 sm:$0xff]   ;;  %v7409_v58 = vld [vmem:[#allocation16_spill] sm:$0xff] }
 0x220   : > { %4531 = vst [vmem:[%s7233_s27 + $0x48] sm:$0xff] %v4515_v33  ;;  %v4518_v38 = vadd.f32 %v7198_v60, %v4005_v17  ;;  %v4007_v39 = vadd.f32 %v4006_v41, %v3954_v16  ;;  %v6043_v60 = vld [vmem:[%s6442_s28 + $0xc28] ss:$16 sps:$4 sm:$0xff]   ;;  %v6081_v61 = vld [vmem:[%s6442_s28 + $0xd6c] ss:$16 sps:$4 sm:$0xff]  }
 0x221   : > { %4336 = vmatpush1.bf16.msra.mxu0 %v6031_v50  ;;  %4389 = vmatpush1.bf16.msra.mxu1 %v6034_v54  ;;  %v6076_v43 = vld [vmem:[%s6442_s28 + $0xf88] ss:$16 sps:$4 sm:$0xff]   ;;  %v6084_v56 = vld [vmem:[%s6442_s28 + $0xf6c] ss:$16 sps:$4 sm:$0xff]  }
 0x222   : > { %4337 = vmatprep.subr.bf16.mxu0 %v6039_v14  ;;  %4390 = vmatprep.subr.bf16.mxu1 %v6042_v46  ;;  %4534 = vst [vmem:[%s7233_s27 + $0x60] sm:$0xff] %v4518_v38  ;;  %v4519_v42 = vadd.f32 %v7205_v32, %v4007_v39  ;;  %v6052_v32 = vld [vmem:[%s6442_s28 + $0xe08] ss:$16 sps:$4 sm:$0xff]   ;;  %v6087_v0 = vld [vmem:[%s6442_s28 + $0xd4c] ss:$16 sps:$4 sm:$0xff]  }
 0x223   : > { %v6079_v51 = vld [vmem:[%s6442_s28 + $0xd68] ss:$16 sps:$4 sm:$0xff]   ;;  %v6090_v55 = vld [vmem:[%s6442_s28 + $0xf4c] ss:$16 sps:$4 sm:$0xff]  }
 0x224   : > { %4535 = vst [vmem:[%s7233_s27 + $0x68] sm:$0xff] %v4519_v42  ;;  %v6082_v20 = vld [vmem:[%s6442_s28 + $0xf68] ss:$16 sps:$4 sm:$0xff]   ;;  %v6093_v19 = vld [vmem:[%s6442_s28 + $0xd2c] ss:$16 sps:$4 sm:$0xff]  }
 0x225   : > { %4338 = vmatpush1.bf16.msra.mxu0 %v6037_v53  ;;  %4391 = vmatpush1.bf16.msra.mxu1 %v6040_v6  ;;  %v6085_v62 = vld [vmem:[%s6442_s28 + $0xd48] ss:$16 sps:$4 sm:$0xff]   ;;  %v6096_v47 = vld [vmem:[%s6442_s28 + $0xf2c] ss:$16 sps:$4 sm:$0xff]  }
 0x226   : > { %4339 = vmatprep.subr.bf16.mxu0 %v6045_v13  ;;  %4392 = vmatprep.subr.bf16.mxu1 %v6048_v10  ;;  %v6088_v25 = vld [vmem:[%s6442_s28 + $0xf48] ss:$16 sps:$4 sm:$0xff]   ;;  %v6099_v11 = vld [vmem:[%s6442_s28 + $0xd0c] ss:$16 sps:$4 sm:$0xff]  }
 0x227   : > { %v6091_v4 = vld [vmem:[%s6442_s28 + $0xd28] ss:$16 sps:$4 sm:$0xff]   ;;  %v6102_v1 = vld [vmem:[%s6442_s28 + $0xf0c] ss:$16 sps:$4 sm:$0xff]  }
 0x228   : > { %v6094_v28 = vld [vmem:[%s6442_s28 + $0xf28] ss:$16 sps:$4 sm:$0xff]  }
 0x229   : > { %4340 = vmatpush1.bf16.msra.mxu0 %v6043_v60  ;;  %4393 = vmatpush1.bf16.msra.mxu1 %v6046_v15  ;;  %v6097_v29 = vld [vmem:[%s6442_s28 + $0xd08] ss:$16 sps:$4 sm:$0xff]  }
 0x22a   : > { %4341 = vmatprep.subr.bf16.mxu0 %v6051_v35  ;;  %4394 = vmatprep.subr.bf16.mxu1 %v6054_v34  ;;  %v6100_v5 = vld [vmem:[%s6442_s28 + $0xf08] ss:$16 sps:$4 sm:$0xff]  }
 0x22b   : > { %v7406_v7 = vld [vmem:[#allocation13_spill] sm:$0xff]  ;;  %v7408_v30 = vld [vmem:[#allocation15_spill] sm:$0xff] }
 0x22c   : > { %v7410_v27 = vld [vmem:[#allocation17_spill] sm:$0xff] }
 0x22d   : > { %4342 = vmatpush1.bf16.msra.mxu0 %v6049_v37  ;;  %4395 = vmatpush1.bf16.msra.mxu1 %v6052_v32 }
 0x22e   : > { %4343 = vmatprep.subr.bf16.mxu0 %v6057_v44  ;;  %4396 = vmatprep.subr.bf16.mxu1 %v6060_v26 }
 0x231   : > { %4344 = vmatpush2.bf16.msra.mxu0 %v6055_v36  ;;  %4397 = vmatpush2.bf16.msra.mxu1 %v6058_v59 }
 0x232   : > { %4345 = vmatprep.subr.bf16.mxu0 %v6063_v22  ;;  %4398 = vmatprep.subr.bf16.mxu1 %v6066_v24 }
 0x235   : > { %4346 = vmatpush2.bf16.msra.mxu0 %v6061_v52  ;;  %4399 = vmatpush2.bf16.msra.mxu1 %v6064_v9 }
 0x236   : > { %4347 = vmatprep.subr.bf16.mxu0 %v6069_v3  ;;  %4400 = vmatprep.subr.bf16.mxu1 %v6072_v48 }
 0x239   : > { %4348 = vmatpush2.bf16.msra.mxu0 %v6067_v2  ;;  %4401 = vmatpush2.bf16.msra.mxu1 %v6070_v8 }
 0x23a   : > { %4349 = vmatprep.subr.bf16.mxu0 %v6075_v63  ;;  %4402 = vmatprep.subr.bf16.mxu1 %v6078_v45 }
 0x23d   : > { %4350 = vmatpush2.bf16.msra.mxu0 %v6073_v49  ;;  %4403 = vmatpush2.bf16.msra.mxu1 %v6076_v43 }
 0x23e   : > { %4351 = vmatprep.subr.bf16.mxu0 %v6081_v61  ;;  %4404 = vmatprep.subr.bf16.mxu1 %v6084_v56 }
 0x241   : > { %4352 = vmatpush2.bf16.msra.mxu0 %v6079_v51  ;;  %4405 = vmatpush2.bf16.msra.mxu1 %v6082_v20 }
 0x242   : > { %4353 = vmatprep.subr.bf16.mxu0 %v6087_v0  ;;  %4406 = vmatprep.subr.bf16.mxu1 %v6090_v55 }
 0x245   : > { %4354 = vmatpush2.bf16.msra.mxu0 %v6085_v62  ;;  %4407 = vmatpush2.bf16.msra.mxu1 %v6088_v25 }
 0x246   : > { %4355 = vmatprep.subr.bf16.mxu0 %v6093_v19  ;;  %4408 = vmatprep.subr.bf16.mxu1 %v6096_v47 }
 0x249   : > { %4356 = vmatpush2.bf16.msra.mxu0 %v6091_v4  ;;  %4409 = vmatpush2.bf16.msra.mxu1 %v6094_v28 }
 0x24a   : > { %4357 = vmatprep.subr.bf16.mxu0 %v6099_v11  ;;  %4410 = vmatprep.subr.bf16.mxu1 %v6102_v1 }
 0x24d   : > { %4358 = vmatpush2.bf16.msra.mxu0 %v6097_v29  ;;  %4411 = vmatpush2.bf16.msra.mxu1 %v6100_v5 }
 0x24f   : > { %v4043_v12 = vpop.f32.mrf.mxu0 }
 0x250   : > { %4360 = vmatmul.mubr.bf16.vlgmr.msra.gmra.mxu0 %v6832_v18  ;;  %4413 = vmatmul.mubr.bf16.vlgmr.msra.gmra.mxu1 %v7406_v7  ;;  %v4096_v21 = vpop.f32.mrf.mxu1 }
 0x251   : > { %4369 = vmatprep.mubr.bf16.mxu0 %v7407_v31  ;;  %4422 = vmatprep.mubr.bf16.mxu1 %v7408_v30  ;;  %v4045_v50 = vpop.f32.mrf.mxu0  ;;  %v4097_v56 = vadd.f32 %v4096_v21, %v4043_v12  ;;  %v4496_v12 = vsub.s32 2, %v7153_v23 }
 0x252   : > { %v4098_v54 = vpop.f32.mrf.mxu1 }
 0x253   : > { %v4047_v40 = vpop.f32.mrf.mxu0  ;;  %v4099_v51 = vadd.f32 %v4098_v54, %v4045_v50 }
 0x254   : > { %v4100_v41 = vpop.f32.mrf.mxu1 }
 0x255   : > { %v4049_v14 = vpop.f32.mrf.mxu0  ;;  %v4101_v62 = vadd.f32 %v4100_v41, %v4047_v40 }
 0x256   : > { %v4102_v33 = vpop.f32.mrf.mxu1 }
 0x257   : > { %v4053_v46 = vpop.f32.mrf.mxu0  ;;  %v4103_v19 = vadd.f32 %v4102_v33, %v4049_v14 }
 0x258   : > { %4370 = vmatmul.mubr.bf16.gmra.mxu0 %v7409_v58  ;;  %4423 = vmatmul.mubr.bf16.gmra.mxu1 %v7410_v27  ;;  %v4106_v18 = vpop.f32.mrf.mxu1 }
 0x259   : > { %v4055_v16 = vpop.f32.mrf.mxu0  ;;  %v4107_v28 = vadd.f32 %v4106_v18, %v4053_v46  ;;  %v4500_v46 = vsub.s32 3, %v7153_v23 }
 0x25a   : > { %v4108_v17 = vpop.f32.mrf.mxu1 }
 0x25b   : > { %v4057_v38 = vpop.f32.mrf.mxu0  ;;  %v4109_v31 = vadd.f32 %v4108_v17, %v4055_v16  ;;  %v4501_v23 = vrot.slane %v7176_v57, %v4500_v46 }
 0x25c   : > { %v4110_v39 = vpop.f32.mrf.mxu1 }
 0x25d   : > { %v4059_v53 = vpop.f32.mrf.mxu0  ;;  %v4111_v21 = vadd.f32 %v4110_v39, %v4057_v38 }
 0x25e   : > { %v4112_v13 = vpop.f32.mrf.mxu1 }
 0x25f   : > { %v4113_v18 = vadd.f32 %v4112_v13, %v4059_v53 }
 0x28f   : > { %v4149_v6 = vpop.f32.mrf.mxu0 }
 0x290   : > { %v4202_v10 = vpop.f32.mrf.mxu1  ;;  %v4150_v20 = vadd.f32 %v4149_v6, %v4097_v56 }
 0x291   : > { %v4151_v42 = vpop.f32.mrf.mxu0 }
 0x292   : > { %v4204_v60 = vpop.f32.mrf.mxu1  ;;  %v4152_v25 = vadd.f32 %v4151_v42, %v4099_v51  ;;  %v4203_v47 = vadd.f32 %v4202_v10, %v4150_v20 }
 0x293   : > { %v4153_v15 = vpop.f32.mrf.mxu0 }
 0x294   : > { %v4206_v35 = vpop.f32.mrf.mxu1  ;;  %v4154_v4 = vadd.f32 %v4153_v15, %v4101_v62  ;;  %v4205_v29 = vadd.f32 %v4204_v60, %v4152_v25 }
 0x295   : > { %v4155_v34 = vpop.f32.mrf.mxu0 }
 0x296   : > { %v4208_v37 = vpop.f32.mrf.mxu1  ;;  %v4156_v5 = vadd.f32 %v4155_v34, %v4103_v19  ;;  %v4207_v58 = vadd.f32 %v4206_v35, %v4154_v4  ;;  %v4497_v35 = vrot.slane %v7176_v57, %v4496_v12 }
 0x297   : > { %v4159_v32 = vpop.f32.mrf.mxu0 }
 0x298   : > { %v4212_v44 = vpop.f32.mrf.mxu1  ;;  %v4160_v30 = vadd.f32 %v4159_v32, %v4107_v28  ;;  %v4209_v41 = vadd.f32 %v4208_v37, %v4156_v5 }
 0x299   : > { %v4161_v26 = vpop.f32.mrf.mxu0 }
 0x29a   : > { %v4214_v36 = vpop.f32.mrf.mxu1  ;;  %v4162_v50 = vadd.f32 %v4161_v26, %v4109_v31  ;;  %v4213_v6 = vadd.f32 %v4212_v44, %v4160_v30 }
 0x29b   : > { %v4163_v59 = vpop.f32.mrf.mxu0 }
 0x29c   : > { %v4216_v22 = vpop.f32.mrf.mxu1  ;;  %v4164_v10 = vadd.f32 %v4163_v59, %v4111_v21  ;;  %v4215_v34 = vadd.f32 %v4214_v36, %v4162_v50 }
 0x29d   : > { %v4165_v24 = vpop.f32.mrf.mxu0 }
 0x29e   : > { %v7314_v52 = vpop.f32.mrf.mxu1  ;;  %v4166_v38 = vadd.f32 %v4165_v24, %v4113_v18  ;;  %v4217_v53 = vadd.f32 %v4216_v22, %v4164_v10 }
 0x2a0   : > { %v4219_v36 = vadd.f32 %v7314_v52, %v4166_v38 }
 0x2cf   : > { %v4255_v9 = vpop.f32.mrf.mxu0 }
 0x2d0   : > { %v4308_v3 = vpop.f32.mrf.mxu1  ;;  %v4256_v7 = vadd.f32 %v4255_v9, %v4203_v47 }
 0x2d1   : > { %v4257_v48 = vpop.f32.mrf.mxu0 }
 0x2d2   : > { %v4310_v2 = vpop.f32.mrf.mxu1  ;;  %v4258_v27 = vadd.f32 %v4257_v48, %v4205_v29  ;;  %v4309_v14 = vadd.f32 %v4308_v3, %v4256_v7 }
 0x2d3   : > { %v4259_v8 = vpop.f32.mrf.mxu0 }
 0x2d4   : > { %v4312_v63 = vpop.f32.mrf.mxu1  ;;  %v4260_v33 = vadd.f32 %v4259_v8, %v4207_v58  ;;  %v4311_v16 = vadd.f32 %v4310_v2, %v4258_v27 }
 0x2d5   : > { %v4261_v45 = vpop.f32.mrf.mxu0 }
 0x2d6   : > { %v4314_v49 = vpop.f32.mrf.mxu1  ;;  %v4262_v17 = vadd.f32 %v4261_v45, %v4209_v41  ;;  %v4313_v37 = vadd.f32 %v4312_v63, %v4260_v33 }
 0x2d7   : > { %v4265_v43 = vpop.f32.mrf.mxu0 }
 0x2d8   : > { %v4318_v61 = vpop.f32.mrf.mxu1  ;;  %v4266_v39 = vadd.f32 %v4265_v43, %v4213_v6  ;;  %v4315_v48 = vadd.f32 %v4314_v49, %v4262_v17 }
 0x2d9   : > { %v4267_v0 = vpop.f32.mrf.mxu0 }
 0x2da   : > { %v4320_v55 = vpop.f32.mrf.mxu1  ;;  %v4268_v13 = vadd.f32 %v4267_v0, %v4215_v34  ;;  %v4319_v24 = vadd.f32 %v4318_v61, %v4266_v39 }
 0x2db   : > { %v4269_v11 = vpop.f32.mrf.mxu0 }
 0x2dc   : > { %v4322_v1 = vpop.f32.mrf.mxu1  ;;  %v4270_v63 = vadd.f32 %v4269_v11, %v4217_v53  ;;  %v4321_v22 = vadd.f32 %v4320_v55, %v4268_v13 }
 0x2dd   : > { %v4271_v54 = vpop.f32.mrf.mxu0 }
 0x2de   : > { %v4324_v40 = vpop.f32.mrf.mxu1  ;;  %v4272_v49 = vadd.f32 %v4271_v54, %v4219_v36  ;;  %v4323_v4 = vadd.f32 %v4322_v1, %v4270_v63 }
 0x2e0   : > { %v4325_v7 = vadd.f32 %v4324_v40, %v4272_v49 }
 0x310   : > { %v4361_v42 = vpop.f32.mrf.mxu0  ;;  %v4414_v60 = vpop.f32.mrf.mxu1 }
 0x311   : > { %v4362_v15 = vadd.f32 %v4361_v42, %v4309_v14 }
 0x312   : > { %v4363_v32 = vpop.f32.mrf.mxu0  ;;  %v4416_v26 = vpop.f32.mrf.mxu1 }
 0x313   : > { %v4415_v9 = vadd.f32 %v4414_v60, %v4362_v15  ;;  %v4364_v3 = vadd.f32 %v4363_v32, %v4311_v16 }
 0x314   : > { %v4365_v44 = vpop.f32.mrf.mxu0  ;;  %v4418_v59 = vpop.f32.mrf.mxu1 }
 0x315   : > { %v4508_v2 = vadd.f32 %v4497_v35, %v4415_v9  ;;  %v4417_v8 = vadd.f32 %v4416_v26, %v4364_v3  ;;  %v4366_v45 = vadd.f32 %v4365_v44, %v4313_v37 }
 0x316   : > { %v4367_v43 = vpop.f32.mrf.mxu0  ;;  %v4420_v56 = vpop.f32.mrf.mxu1 }
 0x317   : > { %4524 = vst [vmem:[%s7233_s27 + $0x10] sm:$0xff] %v4508_v2  ;;  %v4509_v51 = vadd.f32 %v4501_v23, %v4417_v8  ;;  %v4419_v20 = vadd.f32 %v4418_v59, %v4366_v45  ;;  %v4368_v57 = vadd.f32 %v4367_v43, %v4315_v48 }
 0x318   : > { %v4371_v0 = vpop.f32.mrf.mxu0  ;;  %v4424_v62 = vpop.f32.mrf.mxu1 }
 0x319   : > { %4525 = vst [vmem:[%s7233_s27 + $0x18] sm:$0xff] %v4509_v51  ;;  %v4512_v25 = vadd.f32 %v4497_v35, %v4419_v20  ;;  %v4421_v19 = vadd.f32 %v4420_v56, %v4368_v57  ;;  %v4372_v47 = vadd.f32 %v4371_v0, %v4319_v24 }
 0x31a   : > { %v4373_v52 = vpop.f32.mrf.mxu0  ;;  %v4426_v61 = vpop.f32.mrf.mxu1 }
 0x31b   : > { %4528 = vst [vmem:[%s7233_s27 + $0x30] sm:$0xff] %v4512_v25  ;;  %v4513_v28 = vadd.f32 %v4501_v23, %v4421_v19  ;;  %v4425_v11 = vadd.f32 %v4424_v62, %v4372_v47  ;;  %v4374_v29 = vadd.f32 %v4373_v52, %v4321_v22 }
 0x31c   : > { %v4375_v55 = vpop.f32.mrf.mxu0  ;;  %v4428_v5 = vpop.f32.mrf.mxu1 }
 0x31d   : > { %4529 = vst [vmem:[%s7233_s27 + $0x38] sm:$0xff] %v4513_v28  ;;  %v4516_v31 = vadd.f32 %v4497_v35, %v4425_v11  ;;  %v4427_v30 = vadd.f32 %v4426_v61, %v4374_v29  ;;  %v4376_v58 = vadd.f32 %v4375_v55, %v4323_v4 }
 0x31e   : > { %v4377_v27 = vpop.f32.mrf.mxu0  ;;  %v4430_v50 = vpop.f32.mrf.mxu1 }
 0x31f   : > { %4532 = vst [vmem:[%s7233_s27 + $0x50] sm:$0xff] %v4516_v31  ;;  %v4517_v1 = vadd.f32 %v4501_v23, %v4427_v30  ;;  %v4429_v12 = vadd.f32 %v4428_v5, %v4376_v58  ;;  %v4378_v21 = vadd.f32 %v4377_v27, %v4325_v7 }
 0x321   : > { %4533 = vst [vmem:[%s7233_s27 + $0x58] sm:$0xff] %v4517_v1  ;;  %v4520_v54 = vadd.f32 %v4497_v35, %v4429_v12  ;;  %v4431_v41 = vadd.f32 %v4430_v50, %v4378_v21 }
 0x323   : > { %4536 = vst [vmem:[%s7233_s27 + $0x70] sm:$0xff] %v4520_v54  ;;  %v4521_v40 = vadd.f32 %v4501_v23, %v4431_v41 }
 0x325   : > { %4537 = vst [vmem:[%s7233_s27 + $0x78] sm:$0xff] %v4521_v40 }
 0x326   : > { %6198 = shalt.err (!%p6195_p2)
}
 0x327   : > { %s6199_s9 = scalar_lea.hbm %s7332_s6, 2048  ;;  %s6203_s5 = scalar_lea.hbm %s7386_s3, 8192 }
 0x328   : > { %p6200_p4 = scmp.ne.s32.totalorder %s7332_s6, %s6199_s9  ;;  %p6204_p10 = scmp.lt.s32.totalorder %s7332_s6, %s7386_s3 }
 0x329   : > { %p6205_p11 = scmp.lt.s32.totalorder %s6203_s5, %s6199_s9 }
 0x32a   : > { %p6201_p5 = pnand %p6200_p4, %p7411_p3 }
 0x32b   : > { %p6206_p9 = por %p6205_p11, %p6204_p10 }
 0x32c   : > { %p6202_p7 = pneg %p6201_p5 }
 0x32e   : > { %p6207_p6 = pnand %p6206_p9, %p6202_p7 }
 0x330   : > { %6210 = shalt.err (!%p6207_p6)
}
 0x331   : > { %s6279_s27 = smov 512   ;;  %s6280_s8 = smov 2048  }
 0x332   : > { %s6281_s30 = smov 32  }
 0x333   : > { %5258 = dma.vmem_to_hbm [thread:$0]  (%p7411_p3), %s7334_s21, 2048, %s7332_s6, %s4539_s15, %s6279_s27, %s6280_s8, %s6281_s30  }
 0x334 PF: > { %p5278_p8 = scmp.ge.s32.totalorder %s6269_s17, 2  ;;  %s4570_s7 = sand.u32 1, %s6249_s12  }
 0x335   : > { %p7412_p13 = scmp.ne.s32.totalorder %s7397_s26, 0  ;;  %s4571_s11 = scalar_lea.sflag [#allocation5], %s4570_s7 }
 0x337   : > { %p5272_p1 = pnand %p5278_p8, %p7412_p13 }
 0x339   : > { %p5273_p12 = pneg %p5272_p1 }
 0x33b   : > { %6244 = dma.done.wait (%p5273_p12), %s4571_s11, 2048  }
 0x33c   : > { %6246 = vsyncadd (%p5273_p12), %s4571_s11, 4294965248  ;;  %s20_s17 = sadd.s32 1, %s6269_s17   ;;  %s7413_s12 = smov %s6253_s13 }
 0x33d   : > { %p17_p0 = scmp.ge.s32.totalorder %s20_s17, 6   ;;  %s7414_s13 = smov %s6257_s14 }
 0x33e   : > { %s7415_s14 = smov %s6348_s23  ;;  %s7416_s15 = smov %s6265_s16 }
 0x33f   : > { %s7417_s16 = smov %s7419_s18  ;;  %19 = sbr.rel (!%p17_p0) target bundleno = 7 (0x7), region = 102 }
 0x344   :  { %4576 = vsyncpa [#allocation4], 1 }
 0x345   :  { %4578 = vsyncpa [#allocation4 + $0x1], 1 }
 0x346   :  { %4579 = vsyncpa [#allocation7], 1 }
 0x347   :  { %4581 = vsyncpa [#allocation7 + $0x1], 1 }
 0x348   :  { %4582 = vsyncpa [#allocation5], 1 }
 0x349   :  { %4584 = vsyncpa [#allocation5 + $0x1], 1 }

</bundles_post_ra>
